<compile_context>
chip_gen: v7x
topology: tpu7x:2x2x1
jax: 0.10.0
libtpu: 0.0.40
codegen_flags: <defaults>
</compile_context>

<pallas_src>
import numpy as np
import jax
import jax.numpy as jnp
from jax import lax
from jax.experimental import pallas as pl
from jax.experimental.pallas import tpu as pltpu


def _bilstm_kernel(emb_ref,   # (T, bB, E)   compute dtype (bf16/f32)
                   wih_ref,   # (E, 8H)      compute dtype  [W_ih_f | W_ih_b]
                   whhf_ref,  # (H, 4H)      compute dtype
                   whhb_ref,  # (H, 4H)      compute dtype
                   b_ref,     # (1, 8H)      f32            [b_f | b_b]
                   len_ref,   # (bB, 1)      i32  real (non-PAD) lengths
                   out_ref,   # (T, bB, 2H)  f32  time-major output
                   ctx_ref,   # (bB, 2H)     f32  "real context"
                   gxf_ref,   # scratch (T, bB, 4H) f32
                   gxb_ref):  # scratch (T, bB, 4H) f32
    T, bB, E = emb_ref.shape
    H = whhf_ref.shape[0]
    H4 = 4 * H
    cdt = whhf_ref.dtype          # matmul operand dtype (bf16)

    # ---- Stage 1: input projection for BOTH directions as one big MXU matmul.
    # bB is a multiple of 8, so these reshapes are layout no-ops; bias folded
    # in here so the recurrence never re-broadcasts it.  Results are stored
    # time-major so each per-step load is a dense (bB, 4H) tile.
    x2d = emb_ref[...].reshape(T * bB, E)
    gx = jnp.dot(x2d, wih_ref[...], preferred_element_type=jnp.float32) + b_ref[...]
    gx3 = gx.reshape(T, bB, 2 * H4)
    gxf_ref[...] = gx3[:, :, 0:H4]
    gxb_ref[...] = gx3[:, :, H4:2 * H4]

    # real_context target timestep per row (length-0 rows wrap to T-1, matching
    # the reference's out[:, -1]).
    lens = len_ref[...]                                   # (bB, 1) int32
    tgt = jnp.where(lens > 0, lens - 1, T - 1)            # (bB, 1)

    # ---- Stage 2: fused fwd+bwd recurrence with folded-in ctx selection ----
    def cell(gates, c):
        i = jax.nn.sigmoid(gates[:, 0 * H:1 * H])
        f = jax.nn.sigmoid(gates[:, 1 * H:2 * H])
        g = jnp.tanh(gates[:, 2 * H:3 * H])
        o = jax.nn.sigmoid(gates[:, 3 * H:4 * H])
        c_new = f * c + i * g
        return o * jnp.tanh(c_new), c_new

    def body(t, carry):
        h_f, c_f, h_b, c_b, ctx_f, ctx_b = carry
        t_rev = T - 1 - t
        # Two independent recurrent matmuls (use the OLD h's): one direction's
        # MXU work overlaps the other direction's VPU/EUP gate math.
        hh_f = jnp.dot(h_f.astype(cdt), whhf_ref[...],
                       preferred_element_type=jnp.float32)
        hh_b = jnp.dot(h_b.astype(cdt), whhb_ref[...],
                       preferred_element_type=jnp.float32)
        h_f, c_f = cell(gxf_ref[t] + hh_f, c_f)
        h_b, c_b = cell(gxb_ref[t_rev] + hh_b, c_b)
        # Dense (bB, H) stores into the time-major output block.
        out_ref[t, :, 0:H] = h_f
        out_ref[t_rev, :, H:2 * H] = h_b
        # real_context selection: tiny VPU filler under the matmul/EUP slack.
        ctx_f = jnp.where(tgt == t, h_f, ctx_f)
        ctx_b = jnp.where(tgt == t_rev, h_b, ctx_b)
        return (h_f, c_f, h_b, c_b, ctx_f, ctx_b)

    z = jnp.zeros((bB, H), jnp.float32)
    unroll = True if T <= 32 else 4
    _, _, _, _, ctx_f, ctx_b = lax.fori_loop(
        0, T, body, (z, z, z, z, z, z), unroll=unroll)

    ctx_ref[:, 0:H] = ctx_f
    ctx_ref[:, H:2 * H] = ctx_b


def encoder_forward(params, input_ids, input_masking, *, batch_block=None,
                    compute_dtype=jnp.bfloat16):
    """input_ids: (B,T) int32; input_masking: (B,T) int (1 = PAD, 0 = real).

    Returns (output (B,T,2H), real_context (B,1,2H)).
    """
    # TODO(synk): the nn.Embedding vocab-table gather has no cheap in-kernel
    # equivalent here; it stays in XLA glue (an in-kernel DMA gather via
    # scalar-prefetched ids would remove the (T,B,E) HBM intermediate).
    emb_tm = jnp.take(params["embedding"], input_ids.T, axis=0)        # (T,B,E)
    emb_tm = emb_tm.astype(compute_dtype)
    T, B, E = emb_tm.shape
    H = params["whh_f"].shape[0]
    lengths = jnp.sum((input_masking == 0).astype(jnp.int32), axis=1)
    lengths = lengths.astype(jnp.int32).reshape(B, 1)

    # Input-projection weights of both directions packed side by side (one MXU
    # push services both); recurrent weights stay separate (un-fused matmuls).
    wih_all = jnp.concatenate([params["wih_f"], params["wih_b"]],
                              axis=1).astype(compute_dtype)            # (E,8H)
    whh_f = params["whh_f"].astype(compute_dtype)                      # (H,4H)
    whh_b = params["whh_b"].astype(compute_dtype)                      # (H,4H)
    b_all = jnp.concatenate([params["b_f"], params["b_b"]],
                            axis=1).astype(jnp.float32)                # (1,8H)

    # Batch tile: always a multiple of 8 (dense sublanes, layout-no-op
    # reshapes); >= 2 grid steps when B is large so ("parallel",) can shard
    # across v7x's two TensorCores.
    if batch_block is not None:
        bB = int(batch_block)
    elif B <= 16:
        bB = 8
    else:
        bB = max(8, min(64, ((B // 2) // 8) * 8))
    B_pad = ((B + bB - 1) // bB) * bB
    if B_pad != B:
        emb_tm = jnp.pad(emb_tm, ((0, 0), (0, B_pad - B), (0, 0)))
        lengths = jnp.pad(lengths, ((0, B_pad - B), (0, 0)))
    grid = (B_pad // bB,)

    # VMEM budget from the real footprint (pipeline double-buffers + scratch),
    # not a hard-coded 64 MiB (= the entire per-TC VMEM on v7x).
    cb = np.dtype(compute_dtype).itemsize
    vmem_needed = (
        2 * T * bB * E * cb            # emb block (x2 pipeline buffers)
        + 2 * E * 8 * H * cb           # wih_all
        + 2 * 2 * H * 4 * H * cb       # whh_f + whh_b
        + 2 * 8 * H * 4                # bias
        + 2 * bB * 4                   # lengths
        + 2 * T * bB * 2 * H * 4       # out block
        + 2 * bB * 2 * H * 4           # ctx block
        + 2 * T * bB * 4 * H * 4       # gxf + gxb scratches
    )
    # TODO(synk): for long T, chunk the time axis (persist h/c in scratch
    # across chunks) instead of holding full (T,bB,.) slabs in VMEM.
    vmem_limit = int(min(max(2 * vmem_needed, 8 << 20), 48 << 20))

    grid_spec = pltpu.PrefetchScalarGridSpec(
        num_scalar_prefetch=0,
        grid=grid,
        in_specs=[
            pl.BlockSpec((T, bB, E), lambda i: (0, i, 0)),
            pl.BlockSpec((E, 8 * H), lambda i: (0, 0)),
            pl.BlockSpec((H, 4 * H), lambda i: (0, 0)),
            pl.BlockSpec((H, 4 * H), lambda i: (0, 0)),
            pl.BlockSpec((1, 8 * H), lambda i: (0, 0)),
            pl.BlockSpec((bB, 1), lambda i: (i, 0)),
        ],
        out_specs=[
            pl.BlockSpec((T, bB, 2 * H), lambda i: (0, i, 0)),
            pl.BlockSpec((bB, 2 * H), lambda i: (i, 0)),
        ],
        scratch_shapes=[
            pltpu.VMEM((T, bB, 4 * H), jnp.float32),   # fwd input gates
            pltpu.VMEM((T, bB, 4 * H), jnp.float32),   # bwd input gates
        ],
    )

    out_tm, ctx = pl.pallas_call(
        _bilstm_kernel,
        out_shape=(jax.ShapeDtypeStruct((T, B_pad, 2 * H), jnp.float32),
                   jax.ShapeDtypeStruct((B_pad, 2 * H), jnp.float32)),
        grid_spec=grid_spec,
        compiler_params=pltpu.CompilerParams(
            dimension_semantics=("parallel",),
            vmem_limit_bytes=vmem_limit,
        ),
    )(emb_tm, wih_all, whh_f, whh_b, b_all, lengths)

    out = jnp.transpose(out_tm, (1, 0, 2))[:B]       # (B, T, 2H) batch-major
    return out, ctx[:B, None, :]                     # (B, 1, 2H)


def init_params(key, vocab, E, H):
    ks = jax.random.split(key, 7)
    s = 1.0 / float(jnp.sqrt(H))
    return {
        "embedding": jax.random.uniform(ks[0], (vocab, E), jnp.float32, -0.1, 0.1),
        "wih_f": jax.random.uniform(ks[1], (E, 4 * H), jnp.float32, -s, s),
        "whh_f": jax.random.uniform(ks[2], (H, 4 * H), jnp.float32, -s, s),
        "b_f":   jax.random.uniform(ks[3], (1, 4 * H), jnp.float32, -s, s),
        "wih_b": jax.random.uniform(ks[4], (E, 4 * H), jnp.float32, -s, s),
        "whh_b": jax.random.uniform(ks[5], (H, 4 * H), jnp.float32, -s, s),
        "b_b":   jax.random.uniform(ks[6], (1, 4 * H), jnp.float32, -s, s),
    }


# ---- pure-JAX reference (same mixed-precision matmuls, for correctness) ----
def _lstm_scan(emb, wih, whh, b, compute_dtype):
    B, T, E = emb.shape
    H = whh.shape[0]
    wih_c = wih.astype(compute_dtype)
    whh_c = whh.astype(compute_dtype)
    b = b.astype(jnp.float32)

    def step(carry, x_t):
        h, c = carry
        gates = (jnp.dot(x_t.astype(compute_dtype), wih_c,
                         preferred_element_type=jnp.float32)
                 + jnp.dot(h.astype(compute_dtype), whh_c,
                           preferred_element_type=jnp.float32)
                 + b)
        i = jax.nn.sigmoid(gates[:, :H])
        f = jax.nn.sigmoid(gates[:, H:2 * H])
        g = jnp.tanh(gates[:, 2 * H:3 * H])
        o = jax.nn.sigmoid(gates[:, 3 * H:])
        c = f * c + i * g
        h = o * jnp.tanh(c)
        return (h, c), h

    init = (jnp.zeros((B, H), jnp.float32), jnp.zeros((B, H), jnp.float32))
    _, hs = lax.scan(step, init, jnp.swapaxes(emb, 0, 1))
    return jnp.swapaxes(hs, 0, 1)


def reference_forward(params, input_ids, input_masking, *,
                      compute_dtype=jnp.float32):
    emb = jnp.take(params["embedding"], input_ids, axis=0).astype(jnp.float32)
    fwd = _lstm_scan(emb, params["wih_f"], params["whh_f"], params["b_f"],
                     compute_dtype)
    bwd = _lstm_scan(emb[:, ::-1], params["wih_b"], params["whh_b"],
                     params["b_b"], compute_dtype)[:, ::-1]
    out = jnp.concatenate([fwd, bwd], axis=-1)
    lengths = jnp.sum((input_masking == 0).astype(jnp.int32), axis=1)
    ctx = out[jnp.arange(out.shape[0]), lengths - 1][:, None, :]
    return out, ctx


if __name__ == "__main__":
    V, E, H = 16, 32, 32   # input_size (vocab), embedding_size, hidden_size
    B, T = 2, 8

    key = jax.random.PRNGKey(0)
    pkey, ikey = jax.random.split(key)
    params = init_params(pkey, V, E, H)

    input_ids = jax.random.randint(ikey, (B, T), 0, V, dtype=jnp.int32)
    # mask: 0 = real token, 1 = PAD (same convention as the PyTorch module)
    real_lens = jnp.array([5, 8], dtype=jnp.int32)
    input_masking = (jnp.arange(T)[None, :] >= real_lens[:, None]).astype(jnp.int32)

    out, ctx = encoder_forward(params, input_ids, input_masking,
                               compute_dtype=jnp.bfloat16)
    out = jax.block_until_ready(out)
    ctx = jax.block_until_ready(ctx)

    ref_out, ref_ctx = reference_forward(params, input_ids, input_masking,
                                         compute_dtype=jnp.bfloat16)
    assert out.shape == (B, T, 2 * H) and ctx.shape == (B, 1, 2 * H)
    assert jnp.allclose(out, ref_out, atol=1e-3, rtol=1e-3), \
        float(jnp.max(jnp.abs(out - ref_out)))
    assert jnp.allclose(ctx, ref_ctx, atol=1e-3, rtol=1e-3), \
        float(jnp.max(jnp.abs(ctx - ref_ctx)))

    print("KERNEL_OK")
</pallas_src>

<mosaic_0001>
module attributes {stable_mosaic.version = 11 : i64} {
  func.func @_bilstm_kernel(%arg0: i32, %arg1: memref<8x8x32xbf16, #tpu.memory_space<vmem>>, %arg2: memref<32x256xbf16, #tpu.memory_space<vmem>>, %arg3: memref<32x128xbf16, #tpu.memory_space<vmem>>, %arg4: memref<32x128xbf16, #tpu.memory_space<vmem>>, %arg5: memref<1x256xf32, #tpu.memory_space<vmem>>, %arg6: memref<8x1xi32, #tpu.memory_space<vmem>>, %arg7: memref<8x8x64xf32, #tpu.memory_space<vmem>>, %arg8: memref<8x64xf32, #tpu.memory_space<vmem>>, %arg9: memref<8x8x128xf32, #tpu.memory_space<vmem>>, %arg10: memref<8x8x128xf32, #tpu.memory_space<vmem>>) attributes {dimension_semantics = [#tpu.dimension_semantics<parallel>], iteration_bounds = array<i64: 1>, scalar_prefetch = 0 : i64, scratch_operands = 2 : i64, tpu.core_type = #tpu.core_type<tc>, window_params = [{transform_indices = @transform_0, window_bounds = array<i64: 8, 8, 32>}, {pipeline_mode = #tpu.pipeline_mode<synchronous>, transform_indices = @transform_1, window_bounds = array<i64: 32, 256>}, {pipeline_mode = #tpu.pipeline_mode<synchronous>, transform_indices = @transform_2, window_bounds = array<i64: 32, 128>}, {pipeline_mode = #tpu.pipeline_mode<synchronous>, transform_indices = @transform_3, window_bounds = array<i64: 32, 128>}, {pipeline_mode = #tpu.pipeline_mode<synchronous>, transform_indices = @transform_4, window_bounds = array<i64: 1, 256>}, {transform_indices = @transform_5, window_bounds = array<i64: 8, 1>}, {transform_indices = @transform_6, window_bounds = array<i64: 8, 8, 64>}, {transform_indices = @transform_7, window_bounds = array<i64: 8, 64>}]} {
    %c0 = arith.constant 0 : index
    %c0_0 = arith.constant 0 : index
    %c0_1 = arith.constant 0 : index
    %0 = vector.load %arg1[%c0, %c0_0, %c0_1] : memref<8x8x32xbf16, #tpu.memory_space<vmem>>, vector<8x8x32xbf16>
    %1 = vector.shape_cast %0 : vector<8x8x32xbf16> to vector<64x32xbf16>
    %c0_2 = arith.constant 0 : index
    %c0_3 = arith.constant 0 : index
    %2 = vector.load %arg2[%c0_2, %c0_3] : memref<32x256xbf16, #tpu.memory_space<vmem>>, vector<32x256xbf16>
    %cst = arith.constant dense<0.000000e+00> : vector<64x256xf32>
    %3 = tpu.matmul %1, %2, %cst {dimension_numbers = #tpu.dot_dimension_numbers<[1], [0], [0], [1], [0, 0, 1, 1], [], []>} : vector<64x32xbf16>, vector<32x256xbf16>, vector<64x256xf32> -> vector<64x256xf32>
    %c0_4 = arith.constant 0 : index
    %c0_5 = arith.constant 0 : index
    %4 = vector.load %arg5[%c0_4, %c0_5] : memref<1x256xf32, #tpu.memory_space<vmem>>, vector<1x256xf32>
    %5 = vector.broadcast %4 : vector<1x256xf32> to vector<64x256xf32>
    %6 = arith.addf %3, %5 : vector<64x256xf32>
    %7 = vector.shape_cast %6 : vector<64x256xf32> to vector<8x8x256xf32>
    %8 = vector.extract_strided_slice %7 {offsets = [0, 0, 0], sizes = [8, 8, 128], strides = [1, 1, 1]} : vector<8x8x256xf32> to vector<8x8x128xf32>
    %c0_6 = arith.constant 0 : index
    %c0_7 = arith.constant 0 : index
    %c0_8 = arith.constant 0 : index
    %9 = vector.load %arg9[%c0_6, %c0_7, %c0_8] : memref<8x8x128xf32, #tpu.memory_space<vmem>>, vector<8x8x128xf32>
    tpu.vector_store %arg9[%c0_6, %c0_7, %c0_8], %8 {strides = array<i32>} : memref<8x8x128xf32, #tpu.memory_space<vmem>>, vector<8x8x128xf32>,
    %10 = vector.extract_strided_slice %7 {offsets = [0, 0, 128], sizes = [8, 8, 128], strides = [1, 1, 1]} : vector<8x8x256xf32> to vector<8x8x128xf32>
    %c0_9 = arith.constant 0 : index
    %c0_10 = arith.constant 0 : index
    %c0_11 = arith.constant 0 : index
    %11 = vector.load %arg10[%c0_9, %c0_10, %c0_11] : memref<8x8x128xf32, #tpu.memory_space<vmem>>, vector<8x8x128xf32>
    tpu.vector_store %arg10[%c0_9, %c0_10, %c0_11], %10 {strides = array<i32>} : memref<8x8x128xf32, #tpu.memory_space<vmem>>, vector<8x8x128xf32>,
    %c0_12 = arith.constant 0 : index
    %c0_13 = arith.constant 0 : index
    %12 = vector.load %arg6[%c0_12, %c0_13] : memref<8x1xi32, #tpu.memory_space<vmem>>, vector<8x1xi32>
    %c0_i32 = arith.constant 0 : i32
    %13 = vector.broadcast %c0_i32 : i32 to vector<8x1xi32>
    %14 = arith.cmpi sgt, %12, %13 : vector<8x1xi32>
    %c1_i32 = arith.constant 1 : i32
    %15 = vector.broadcast %c1_i32 : i32 to vector<8x1xi32>
    %16 = arith.subi %12, %15 : vector<8x1xi32>
    %c7_i32 = arith.constant 7 : i32
    %17 = vector.broadcast %c7_i32 : i32 to vector<8x1xi32>
    %18 = arith.select %14, %16, %17 : vector<8x1xi1>, vector<8x1xi32>
    %cst_14 = arith.constant 0.000000e+00 : f32
    %19 = vector.broadcast %cst_14 : f32 to vector<8x32xf32>
    %c0_i32_15 = arith.constant 0 : i32
    %c7_i32_16 = arith.constant 7 : i32
    %20 = arith.subi %c7_i32_16, %c0_i32_15 : i32
    %21 = arith.truncf %19 : vector<8x32xf32> to vector<8x32xbf16>
    %c0_17 = arith.constant 0 : index
    %c0_18 = arith.constant 0 : index
    %22 = vector.load %arg3[%c0_17, %c0_18] : memref<32x128xbf16, #tpu.memory_space<vmem>>, vector<32x128xbf16>
    %cst_19 = arith.constant dense<0.000000e+00> : vector<8x128xf32>
    %23 = tpu.matmul %21, %22, %cst_19 {dimension_numbers = #tpu.dot_dimension_numbers<[1], [0], [0], [1], [0, 0, 1, 1], [], []>} : vector<8x32xbf16>, vector<32x128xbf16>, vector<8x128xf32> -> vector<8x128xf32>
    %24 = arith.truncf %19 : vector<8x32xf32> to vector<8x32xbf16>
    %c0_20 = arith.constant 0 : index
    %c0_21 = arith.constant 0 : index
    %25 = vector.load %arg4[%c0_20, %c0_21] : memref<32x128xbf16, #tpu.memory_space<vmem>>, vector<32x128xbf16>
    %cst_22 = arith.constant dense<0.000000e+00> : vector<8x128xf32>
    %26 = tpu.matmul %24, %25, %cst_22 {dimension_numbers = #tpu.dot_dimension_numbers<[1], [0], [0], [1], [0, 0, 1, 1], [], []>} : vector<8x32xbf16>, vector<32x128xbf16>, vector<8x128xf32> -> vector<8x128xf32>
    %27 = arith.index_cast %c0_i32_15 : i32 to index
    %c0_23 = arith.constant 0 : index
    %c0_24 = arith.constant 0 : index
    %28 = vector.load %arg9[%27, %c0_23, %c0_24] : memref<8x8x128xf32, #tpu.memory_space<vmem>>, vector<1x8x128xf32>
    %29 = vector.shape_cast %28 : vector<1x8x128xf32> to vector<8x128xf32>
    %30 = arith.addf %29, %23 : vector<8x128xf32>
    %31 = vector.extract_strided_slice %30 {offsets = [0, 0], sizes = [8, 32], strides = [1, 1]} : vector<8x128xf32> to vector<8x32xf32>
    %32 = arith.negf %31 : vector<8x32xf32>
    %33 = math.exp %32 : vector<8x32xf32>
    %cst_25 = arith.constant 1.000000e+00 : f32
    %34 = vector.broadcast %cst_25 : f32 to vector<8x32xf32>
    %35 = arith.addf %34, %33 : vector<8x32xf32>
    %36 = arith.divf %34, %35 : vector<8x32xf32>
    %37 = vector.extract_strided_slice %30 {offsets = [0, 32], sizes = [8, 32], strides = [1, 1]} : vector<8x128xf32> to vector<8x32xf32>
    %38 = arith.negf %37 : vector<8x32xf32>
    %39 = math.exp %38 : vector<8x32xf32>
    %cst_26 = arith.constant 1.000000e+00 : f32
    %40 = vector.broadcast %cst_26 : f32 to vector<8x32xf32>
    %41 = arith.addf %40, %39 : vector<8x32xf32>
    %42 = arith.divf %40, %41 : vector<8x32xf32>
    %43 = vector.extract_strided_slice %30 {offsets = [0, 64], sizes = [8, 32], strides = [1, 1]} : vector<8x128xf32> to vector<8x32xf32>
    %44 = math.tanh %43 : vector<8x32xf32>
    %45 = vector.extract_strided_slice %30 {offsets = [0, 96], sizes = [8, 32], strides = [1, 1]} : vector<8x128xf32> to vector<8x32xf32>
    %46 = arith.negf %45 : vector<8x32xf32>
    %47 = math.exp %46 : vector<8x32xf32>
    %cst_27 = arith.constant 1.000000e+00 : f32
    %48 = vector.broadcast %cst_27 : f32 to vector<8x32xf32>
    %49 = arith.addf %48, %47 : vector<8x32xf32>
    %50 = arith.divf %48, %49 : vector<8x32xf32>
    %51 = arith.mulf %42, %19 : vector<8x32xf32>
    %52 = arith.mulf %36, %44 : vector<8x32xf32>
    %53 = arith.addf %51, %52 : vector<8x32xf32>
    %54 = math.tanh %53 : vector<8x32xf32>
    %55 = arith.mulf %50, %54 : vector<8x32xf32>
    %56 = arith.index_cast %20 : i32 to index
    %c0_28 = arith.constant 0 : index
    %c0_29 = arith.constant 0 : index
    %57 = vector.load %arg10[%56, %c0_28, %c0_29] : memref<8x8x128xf32, #tpu.memory_space<vmem>>, vector<1x8x128xf32>
    %58 = vector.shape_cast %57 : vector<1x8x128xf32> to vector<8x128xf32>
    %59 = arith.addf %58, %26 : vector<8x128xf32>
    %60 = vector.extract_strided_slice %59 {offsets = [0, 0], sizes = [8, 32], strides = [1, 1]} : vector<8x128xf32> to vector<8x32xf32>
    %61 = arith.negf %60 : vector<8x32xf32>
    %62 = math.exp %61 : vector<8x32xf32>
    %cst_30 = arith.constant 1.000000e+00 : f32
    %63 = vector.broadcast %cst_30 : f32 to vector<8x32xf32>
    %64 = arith.addf %63, %62 : vector<8x32xf32>
    %65 = arith.divf %63, %64 : vector<8x32xf32>
    %66 = vector.extract_strided_slice %59 {offsets = [0, 32], sizes = [8, 32], strides = [1, 1]} : vector<8x128xf32> to vector<8x32xf32>
    %67 = arith.negf %66 : vector<8x32xf32>
    %68 = math.exp %67 : vector<8x32xf32>
    %cst_31 = arith.constant 1.000000e+00 : f32
    %69 = vector.broadcast %cst_31 : f32 to vector<8x32xf32>
    %70 = arith.addf %69, %68 : vector<8x32xf32>
    %71 = arith.divf %69, %70 : vector<8x32xf32>
    %72 = vector.extract_strided_slice %59 {offsets = [0, 64], sizes = [8, 32], strides = [1, 1]} : vector<8x128xf32> to vector<8x32xf32>
    %73 = math.tanh %72 : vector<8x32xf32>
    %74 = vector.extract_strided_slice %59 {offsets = [0, 96], sizes = [8, 32], strides = [1, 1]} : vector<8x128xf32> to vector<8x32xf32>
    %75 = arith.negf %74 : vector<8x32xf32>
    %76 = math.exp %75 : vector<8x32xf32>
    %cst_32 = arith.constant 1.000000e+00 : f32
    %77 = vector.broadcast %cst_32 : f32 to vector<8x32xf32>
    %78 = arith.addf %77, %76 : vector<8x32xf32>
    %79 = arith.divf %77, %78 : vector<8x32xf32>
    %80 = arith.mulf %71, %19 : vector<8x32xf32>
    %81 = arith.mulf %65, %73 : vector<8x32xf32>
    %82 = arith.addf %80, %81 : vector<8x32xf32>
    %83 = math.tanh %82 : vector<8x32xf32>
    %84 = arith.mulf %79, %83 : vector<8x32xf32>
    %85 = arith.index_cast %c0_i32_15 : i32 to index
    %c0_33 = arith.constant 0 : index
    %c0_34 = arith.constant 0 : index
    %86 = vector.load %arg7[%85, %c0_33, %c0_34] : memref<8x8x64xf32, #tpu.memory_space<vmem>>, vector<1x8x32xf32>
    %87 = vector.shape_cast %86 : vector<1x8x32xf32> to vector<8x32xf32>
    %88 = vector.shape_cast %55 : vector<8x32xf32> to vector<1x8x32xf32>
    tpu.vector_store %arg7[%85, %c0_33, %c0_34], %88 {strides = array<i32>} : memref<8x8x64xf32, #tpu.memory_space<vmem>>, vector<1x8x32xf32>,
    %89 = arith.index_cast %20 : i32 to index
    %c0_35 = arith.constant 0 : index
    %c32 = arith.constant 32 : index
    %90 = vector.load %arg7[%89, %c0_35, %c32] : memref<8x8x64xf32, #tpu.memory_space<vmem>>, vector<1x8x32xf32>
    %91 = vector.shape_cast %90 : vector<1x8x32xf32> to vector<8x32xf32>
    %92 = vector.shape_cast %84 : vector<8x32xf32> to vector<1x8x32xf32>
    tpu.vector_store %arg7[%89, %c0_35, %c32], %92 {strides = array<i32>} : memref<8x8x64xf32, #tpu.memory_space<vmem>>, vector<1x8x32xf32>,
    %93 = vector.broadcast %c0_i32_15 : i32 to vector<8x1xi32>
    %94 = arith.cmpi eq, %18, %93 : vector<8x1xi32>
    %95 = vector.shape_cast %94 : vector<8x1xi1> to vector<8x1xi1>
    %96 = vector.broadcast %95 : vector<8x1xi1> to vector<8x32xi1>
    %97 = arith.select %96, %55, %19 : vector<8x32xi1>, vector<8x32xf32>
    %98 = vector.broadcast %20 : i32 to vector<8x1xi32>
    %99 = arith.cmpi eq, %18, %98 : vector<8x1xi32>
    %100 = vector.shape_cast %99 : vector<8x1xi1> to vector<8x1xi1>
    %101 = vector.broadcast %100 : vector<8x1xi1> to vector<8x32xi1>
    %102 = arith.select %101, %84, %19 : vector<8x32xi1>, vector<8x32xf32>
    %c1_i32_36 = arith.constant 1 : i32
    %c7_i32_37 = arith.constant 7 : i32
    %103 = arith.subi %c7_i32_37, %c1_i32_36 : i32
    %104 = arith.truncf %55 : vector<8x32xf32> to vector<8x32xbf16>
    %c0_38 = arith.constant 0 : index
    %c0_39 = arith.constant 0 : index
    %105 = vector.load %arg3[%c0_38, %c0_39] : memref<32x128xbf16, #tpu.memory_space<vmem>>, vector<32x128xbf16>
    %cst_40 = arith.constant dense<0.000000e+00> : vector<8x128xf32>
    %106 = tpu.matmul %104, %105, %cst_40 {dimension_numbers = #tpu.dot_dimension_numbers<[1], [0], [0], [1], [0, 0, 1, 1], [], []>} : vector<8x32xbf16>, vector<32x128xbf16>, vector<8x128xf32> -> vector<8x128xf32>
    %107 = arith.truncf %84 : vector<8x32xf32> to vector<8x32xbf16>
    %c0_41 = arith.constant 0 : index
    %c0_42 = arith.constant 0 : index
    %108 = vector.load %arg4[%c0_41, %c0_42] : memref<32x128xbf16, #tpu.memory_space<vmem>>, vector<32x128xbf16>
    %cst_43 = arith.constant dense<0.000000e+00> : vector<8x128xf32>
    %109 = tpu.matmul %107, %108, %cst_43 {dimension_numbers = #tpu.dot_dimension_numbers<[1], [0], [0], [1], [0, 0, 1, 1], [], []>} : vector<8x32xbf16>, vector<32x128xbf16>, vector<8x128xf32> -> vector<8x128xf32>
    %110 = arith.index_cast %c1_i32_36 : i32 to index
    %c0_44 = arith.constant 0 : index
    %c0_45 = arith.constant 0 : index
    %111 = vector.load %arg9[%110, %c0_44, %c0_45] : memref<8x8x128xf32, #tpu.memory_space<vmem>>, vector<1x8x128xf32>
    %112 = vector.shape_cast %111 : vector<1x8x128xf32> to vector<8x128xf32>
    %113 = arith.addf %112, %106 : vector<8x128xf32>
    %114 = vector.extract_strided_slice %113 {offsets = [0, 0], sizes = [8, 32], strides = [1, 1]} : vector<8x128xf32> to vector<8x32xf32>
    %115 = arith.negf %114 : vector<8x32xf32>
    %116 = math.exp %115 : vector<8x32xf32>
    %cst_46 = arith.constant 1.000000e+00 : f32
    %117 = vector.broadcast %cst_46 : f32 to vector<8x32xf32>
    %118 = arith.addf %117, %116 : vector<8x32xf32>
    %119 = arith.divf %117, %118 : vector<8x32xf32>
    %120 = vector.extract_strided_slice %113 {offsets = [0, 32], sizes = [8, 32], strides = [1, 1]} : vector<8x128xf32> to vector<8x32xf32>
    %121 = arith.negf %120 : vector<8x32xf32>
    %122 = math.exp %121 : vector<8x32xf32>
    %cst_47 = arith.constant 1.000000e+00 : f32
    %123 = vector.broadcast %cst_47 : f32 to vector<8x32xf32>
    %124 = arith.addf %123, %122 : vector<8x32xf32>
    %125 = arith.divf %123, %124 : vector<8x32xf32>
    %126 = vector.extract_strided_slice %113 {offsets = [0, 64], sizes = [8, 32], strides = [1, 1]} : vector<8x128xf32> to vector<8x32xf32>
    %127 = math.tanh %126 : vector<8x32xf32>
    %128 = vector.extract_strided_slice %113 {offsets = [0, 96], sizes = [8, 32], strides = [1, 1]} : vector<8x128xf32> to vector<8x32xf32>
    %129 = arith.negf %128 : vector<8x32xf32>
    %130 = math.exp %129 : vector<8x32xf32>
    %cst_48 = arith.constant 1.000000e+00 : f32
    %131 = vector.broadcast %cst_48 : f32 to vector<8x32xf32>
    %132 = arith.addf %131, %130 : vector<8x32xf32>
    %133 = arith.divf %131, %132 : vector<8x32xf32>
    %134 = arith.mulf %125, %53 : vector<8x32xf32>
    %135 = arith.mulf %119, %127 : vector<8x32xf32>
    %136 = arith.addf %134, %135 : vector<8x32xf32>
    %137 = math.tanh %136 : vector<8x32xf32>
    %138 = arith.mulf %133, %137 : vector<8x32xf32>
    %139 = arith.index_cast %103 : i32 to index
    %c0_49 = arith.constant 0 : index
    %c0_50 = arith.constant 0 : index
    %140 = vector.load %arg10[%139, %c0_49, %c0_50] : memref<8x8x128xf32, #tpu.memory_space<vmem>>, vector<1x8x128xf32>
    %141 = vector.shape_cast %140 : vector<1x8x128xf32> to vector<8x128xf32>
    %142 = arith.addf %141, %109 : vector<8x128xf32>
    %143 = vector.extract_strided_slice %142 {offsets = [0, 0], sizes = [8, 32], strides = [1, 1]} : vector<8x128xf32> to vector<8x32xf32>
    %144 = arith.negf %143 : vector<8x32xf32>
    %145 = math.exp %144 : vector<8x32xf32>
    %cst_51 = arith.constant 1.000000e+00 : f32
    %146 = vector.broadcast %cst_51 : f32 to vector<8x32xf32>
    %147 = arith.addf %146, %145 : vector<8x32xf32>
    %148 = arith.divf %146, %147 : vector<8x32xf32>
    %149 = vector.extract_strided_slice %142 {offsets = [0, 32], sizes = [8, 32], strides = [1, 1]} : vector<8x128xf32> to vector<8x32xf32>
    %150 = arith.negf %149 : vector<8x32xf32>
    %151 = math.exp %150 : vector<8x32xf32>
    %cst_52 = arith.constant 1.000000e+00 : f32
    %152 = vector.broadcast %cst_52 : f32 to vector<8x32xf32>
    %153 = arith.addf %152, %151 : vector<8x32xf32>
    %154 = arith.divf %152, %153 : vector<8x32xf32>
    %155 = vector.extract_strided_slice %142 {offsets = [0, 64], sizes = [8, 32], strides = [1, 1]} : vector<8x128xf32> to vector<8x32xf32>
    %156 = math.tanh %155 : vector<8x32xf32>
    %157 = vector.extract_strided_slice %142 {offsets = [0, 96], sizes = [8, 32], strides = [1, 1]} : vector<8x128xf32> to vector<8x32xf32>
    %158 = arith.negf %157 : vector<8x32xf32>
    %159 = math.exp %158 : vector<8x32xf32>
    %cst_53 = arith.constant 1.000000e+00 : f32
    %160 = vector.broadcast %cst_53 : f32 to vector<8x32xf32>
    %161 = arith.addf %160, %159 : vector<8x32xf32>
    %162 = arith.divf %160, %161 : vector<8x32xf32>
    %163 = arith.mulf %154, %82 : vector<8x32xf32>
    %164 = arith.mulf %148, %156 : vector<8x32xf32>
    %165 = arith.addf %163, %164 : vector<8x32xf32>
    %166 = math.tanh %165 : vector<8x32xf32>
    %167 = arith.mulf %162, %166 : vector<8x32xf32>
    %168 = arith.index_cast %c1_i32_36 : i32 to index
    %c0_54 = arith.constant 0 : index
    %c0_55 = arith.constant 0 : index
    %169 = vector.load %arg7[%168, %c0_54, %c0_55] : memref<8x8x64xf32, #tpu.memory_space<vmem>>, vector<1x8x32xf32>
    %170 = vector.shape_cast %169 : vector<1x8x32xf32> to vector<8x32xf32>
    %171 = vector.shape_cast %138 : vector<8x32xf32> to vector<1x8x32xf32>
    tpu.vector_store %arg7[%168, %c0_54, %c0_55], %171 {strides = array<i32>} : memref<8x8x64xf32, #tpu.memory_space<vmem>>, vector<1x8x32xf32>,
    %172 = arith.index_cast %103 : i32 to index
    %c0_56 = arith.constant 0 : index
    %c32_57 = arith.constant 32 : index
    %173 = vector.load %arg7[%172, %c0_56, %c32_57] : memref<8x8x64xf32, #tpu.memory_space<vmem>>, vector<1x8x32xf32>
    %174 = vector.shape_cast %173 : vector<1x8x32xf32> to vector<8x32xf32>
    %175 = vector.shape_cast %167 : vector<8x32xf32> to vector<1x8x32xf32>
    tpu.vector_store %arg7[%172, %c0_56, %c32_57], %175 {strides = array<i32>} : memref<8x8x64xf32, #tpu.memory_space<vmem>>, vector<1x8x32xf32>,
    %176 = vector.broadcast %c1_i32_36 : i32 to vector<8x1xi32>
    %177 = arith.cmpi eq, %18, %176 : vector<8x1xi32>
    %178 = vector.shape_cast %177 : vector<8x1xi1> to vector<8x1xi1>
    %179 = vector.broadcast %178 : vector<8x1xi1> to vector<8x32xi1>
    %180 = arith.select %179, %138, %97 : vector<8x32xi1>, vector<8x32xf32>
    %181 = vector.broadcast %103 : i32 to vector<8x1xi32>
    %182 = arith.cmpi eq, %18, %181 : vector<8x1xi32>
    %183 = vector.shape_cast %182 : vector<8x1xi1> to vector<8x1xi1>
    %184 = vector.broadcast %183 : vector<8x1xi1> to vector<8x32xi1>
    %185 = arith.select %184, %167, %102 : vector<8x32xi1>, vector<8x32xf32>
    %c2_i32 = arith.constant 2 : i32
    %c7_i32_58 = arith.constant 7 : i32
    %186 = arith.subi %c7_i32_58, %c2_i32 : i32
    %187 = arith.truncf %138 : vector<8x32xf32> to vector<8x32xbf16>
    %c0_59 = arith.constant 0 : index
    %c0_60 = arith.constant 0 : index
    %188 = vector.load %arg3[%c0_59, %c0_60] : memref<32x128xbf16, #tpu.memory_space<vmem>>, vector<32x128xbf16>
    %cst_61 = arith.constant dense<0.000000e+00> : vector<8x128xf32>
    %189 = tpu.matmul %187, %188, %cst_61 {dimension_numbers = #tpu.dot_dimension_numbers<[1], [0], [0], [1], [0, 0, 1, 1], [], []>} : vector<8x32xbf16>, vector<32x128xbf16>, vector<8x128xf32> -> vector<8x128xf32>
    %190 = arith.truncf %167 : vector<8x32xf32> to vector<8x32xbf16>
    %c0_62 = arith.constant 0 : index
    %c0_63 = arith.constant 0 : index
    %191 = vector.load %arg4[%c0_62, %c0_63] : memref<32x128xbf16, #tpu.memory_space<vmem>>, vector<32x128xbf16>
    %cst_64 = arith.constant dense<0.000000e+00> : vector<8x128xf32>
    %192 = tpu.matmul %190, %191, %cst_64 {dimension_numbers = #tpu.dot_dimension_numbers<[1], [0], [0], [1], [0, 0, 1, 1], [], []>} : vector<8x32xbf16>, vector<32x128xbf16>, vector<8x128xf32> -> vector<8x128xf32>
    %193 = arith.index_cast %c2_i32 : i32 to index
    %c0_65 = arith.constant 0 : index
    %c0_66 = arith.constant 0 : index
    %194 = vector.load %arg9[%193, %c0_65, %c0_66] : memref<8x8x128xf32, #tpu.memory_space<vmem>>, vector<1x8x128xf32>
    %195 = vector.shape_cast %194 : vector<1x8x128xf32> to vector<8x128xf32>
    %196 = arith.addf %195, %189 : vector<8x128xf32>
    %197 = vector.extract_strided_slice %196 {offsets = [0, 0], sizes = [8, 32], strides = [1, 1]} : vector<8x128xf32> to vector<8x32xf32>
    %198 = arith.negf %197 : vector<8x32xf32>
    %199 = math.exp %198 : vector<8x32xf32>
    %cst_67 = arith.constant 1.000000e+00 : f32
    %200 = vector.broadcast %cst_67 : f32 to vector<8x32xf32>
    %201 = arith.addf %200, %199 : vector<8x32xf32>
    %202 = arith.divf %200, %201 : vector<8x32xf32>
    %203 = vector.extract_strided_slice %196 {offsets = [0, 32], sizes = [8, 32], strides = [1, 1]} : vector<8x128xf32> to vector<8x32xf32>
    %204 = arith.negf %203 : vector<8x32xf32>
    %205 = math.exp %204 : vector<8x32xf32>
    %cst_68 = arith.constant 1.000000e+00 : f32
    %206 = vector.broadcast %cst_68 : f32 to vector<8x32xf32>
    %207 = arith.addf %206, %205 : vector<8x32xf32>
    %208 = arith.divf %206, %207 : vector<8x32xf32>
    %209 = vector.extract_strided_slice %196 {offsets = [0, 64], sizes = [8, 32], strides = [1, 1]} : vector<8x128xf32> to vector<8x32xf32>
    %210 = math.tanh %209 : vector<8x32xf32>
    %211 = vector.extract_strided_slice %196 {offsets = [0, 96], sizes = [8, 32], strides = [1, 1]} : vector<8x128xf32> to vector<8x32xf32>
    %212 = arith.negf %211 : vector<8x32xf32>
    %213 = math.exp %212 : vector<8x32xf32>
    %cst_69 = arith.constant 1.000000e+00 : f32
    %214 = vector.broadcast %cst_69 : f32 to vector<8x32xf32>
    %215 = arith.addf %214, %213 : vector<8x32xf32>
    %216 = arith.divf %214, %215 : vector<8x32xf32>
    %217 = arith.mulf %208, %136 : vector<8x32xf32>
    %218 = arith.mulf %202, %210 : vector<8x32xf32>
    %219 = arith.addf %217, %218 : vector<8x32xf32>
    %220 = math.tanh %219 : vector<8x32xf32>
    %221 = arith.mulf %216, %220 : vector<8x32xf32>
    %222 = arith.index_cast %186 : i32 to index
    %c0_70 = arith.constant 0 : index
    %c0_71 = arith.constant 0 : index
    %223 = vector.load %arg10[%222, %c0_70, %c0_71] : memref<8x8x128xf32, #tpu.memory_space<vmem>>, vector<1x8x128xf32>
    %224 = vector.shape_cast %223 : vector<1x8x128xf32> to vector<8x128xf32>
    %225 = arith.addf %224, %192 : vector<8x128xf32>
    %226 = vector.extract_strided_slice %225 {offsets = [0, 0], sizes = [8, 32], strides = [1, 1]} : vector<8x128xf32> to vector<8x32xf32>
    %227 = arith.negf %226 : vector<8x32xf32>
    %228 = math.exp %227 : vector<8x32xf32>
    %cst_72 = arith.constant 1.000000e+00 : f32
    %229 = vector.broadcast %cst_72 : f32 to vector<8x32xf32>
    %230 = arith.addf %229, %228 : vector<8x32xf32>
    %231 = arith.divf %229, %230 : vector<8x32xf32>
    %232 = vector.extract_strided_slice %225 {offsets = [0, 32], sizes = [8, 32], strides = [1, 1]} : vector<8x128xf32> to vector<8x32xf32>
    %233 = arith.negf %232 : vector<8x32xf32>
    %234 = math.exp %233 : vector<8x32xf32>
    %cst_73 = arith.constant 1.000000e+00 : f32
    %235 = vector.broadcast %cst_73 : f32 to vector<8x32xf32>
    %236 = arith.addf %235, %234 : vector<8x32xf32>
    %237 = arith.divf %235, %236 : vector<8x32xf32>
    %238 = vector.extract_strided_slice %225 {offsets = [0, 64], sizes = [8, 32], strides = [1, 1]} : vector<8x128xf32> to vector<8x32xf32>
    %239 = math.tanh %238 : vector<8x32xf32>
    %240 = vector.extract_strided_slice %225 {offsets = [0, 96], sizes = [8, 32], strides = [1, 1]} : vector<8x128xf32> to vector<8x32xf32>
    %241 = arith.negf %240 : vector<8x32xf32>
    %242 = math.exp %241 : vector<8x32xf32>
    %cst_74 = arith.constant 1.000000e+00 : f32
    %243 = vector.broadcast %cst_74 : f32 to vector<8x32xf32>
    %244 = arith.addf %243, %242 : vector<8x32xf32>
    %245 = arith.divf %243, %244 : vector<8x32xf32>
    %246 = arith.mulf %237, %165 : vector<8x32xf32>
    %247 = arith.mulf %231, %239 : vector<8x32xf32>
    %248 = arith.addf %246, %247 : vector<8x32xf32>
    %249 = math.tanh %248 : vector<8x32xf32>
    %250 = arith.mulf %245, %249 : vector<8x32xf32>
    %251 = arith.index_cast %c2_i32 : i32 to index
    %c0_75 = arith.constant 0 : index
    %c0_76 = arith.constant 0 : index
    %252 = vector.load %arg7[%251, %c0_75, %c0_76] : memref<8x8x64xf32, #tpu.memory_space<vmem>>, vector<1x8x32xf32>
    %253 = vector.shape_cast %252 : vector<1x8x32xf32> to vector<8x32xf32>
    %254 = vector.shape_cast %221 : vector<8x32xf32> to vector<1x8x32xf32>
    tpu.vector_store %arg7[%251, %c0_75, %c0_76], %254 {strides = array<i32>} : memref<8x8x64xf32, #tpu.memory_space<vmem>>, vector<1x8x32xf32>,
    %255 = arith.index_cast %186 : i32 to index
    %c0_77 = arith.constant 0 : index
    %c32_78 = arith.constant 32 : index
    %256 = vector.load %arg7[%255, %c0_77, %c32_78] : memref<8x8x64xf32, #tpu.memory_space<vmem>>, vector<1x8x32xf32>
    %257 = vector.shape_cast %256 : vector<1x8x32xf32> to vector<8x32xf32>
    %258 = vector.shape_cast %250 : vector<8x32xf32> to vector<1x8x32xf32>
    tpu.vector_store %arg7[%255, %c0_77, %c32_78], %258 {strides = array<i32>} : memref<8x8x64xf32, #tpu.memory_space<vmem>>, vector<1x8x32xf32>,
    %259 = vector.broadcast %c2_i32 : i32 to vector<8x1xi32>
    %260 = arith.cmpi eq, %18, %259 : vector<8x1xi32>
    %261 = vector.shape_cast %260 : vector<8x1xi1> to vector<8x1xi1>
    %262 = vector.broadcast %261 : vector<8x1xi1> to vector<8x32xi1>
    %263 = arith.select %262, %221, %180 : vector<8x32xi1>, vector<8x32xf32>
    %264 = vector.broadcast %186 : i32 to vector<8x1xi32>
    %265 = arith.cmpi eq, %18, %264 : vector<8x1xi32>
    %266 = vector.shape_cast %265 : vector<8x1xi1> to vector<8x1xi1>
    %267 = vector.broadcast %266 : vector<8x1xi1> to vector<8x32xi1>
    %268 = arith.select %267, %250, %185 : vector<8x32xi1>, vector<8x32xf32>
    %c3_i32 = arith.constant 3 : i32
    %c7_i32_79 = arith.constant 7 : i32
    %269 = arith.subi %c7_i32_79, %c3_i32 : i32
    %270 = arith.truncf %221 : vector<8x32xf32> to vector<8x32xbf16>
    %c0_80 = arith.constant 0 : index
    %c0_81 = arith.constant 0 : index
    %271 = vector.load %arg3[%c0_80, %c0_81] : memref<32x128xbf16, #tpu.memory_space<vmem>>, vector<32x128xbf16>
    %cst_82 = arith.constant dense<0.000000e+00> : vector<8x128xf32>
    %272 = tpu.matmul %270, %271, %cst_82 {dimension_numbers = #tpu.dot_dimension_numbers<[1], [0], [0], [1], [0, 0, 1, 1], [], []>} : vector<8x32xbf16>, vector<32x128xbf16>, vector<8x128xf32> -> vector<8x128xf32>
    %273 = arith.truncf %250 : vector<8x32xf32> to vector<8x32xbf16>
    %c0_83 = arith.constant 0 : index
    %c0_84 = arith.constant 0 : index
    %274 = vector.load %arg4[%c0_83, %c0_84] : memref<32x128xbf16, #tpu.memory_space<vmem>>, vector<32x128xbf16>
    %cst_85 = arith.constant dense<0.000000e+00> : vector<8x128xf32>
    %275 = tpu.matmul %273, %274, %cst_85 {dimension_numbers = #tpu.dot_dimension_numbers<[1], [0], [0], [1], [0, 0, 1, 1], [], []>} : vector<8x32xbf16>, vector<32x128xbf16>, vector<8x128xf32> -> vector<8x128xf32>
    %276 = arith.index_cast %c3_i32 : i32 to index
    %c0_86 = arith.constant 0 : index
    %c0_87 = arith.constant 0 : index
    %277 = vector.load %arg9[%276, %c0_86, %c0_87] : memref<8x8x128xf32, #tpu.memory_space<vmem>>, vector<1x8x128xf32>
    %278 = vector.shape_cast %277 : vector<1x8x128xf32> to vector<8x128xf32>
    %279 = arith.addf %278, %272 : vector<8x128xf32>
    %280 = vector.extract_strided_slice %279 {offsets = [0, 0], sizes = [8, 32], strides = [1, 1]} : vector<8x128xf32> to vector<8x32xf32>
    %281 = arith.negf %280 : vector<8x32xf32>
    %282 = math.exp %281 : vector<8x32xf32>
    %cst_88 = arith.constant 1.000000e+00 : f32
    %283 = vector.broadcast %cst_88 : f32 to vector<8x32xf32>
    %284 = arith.addf %283, %282 : vector<8x32xf32>
    %285 = arith.divf %283, %284 : vector<8x32xf32>
    %286 = vector.extract_strided_slice %279 {offsets = [0, 32], sizes = [8, 32], strides = [1, 1]} : vector<8x128xf32> to vector<8x32xf32>
    %287 = arith.negf %286 : vector<8x32xf32>
    %288 = math.exp %287 : vector<8x32xf32>
    %cst_89 = arith.constant 1.000000e+00 : f32
    %289 = vector.broadcast %cst_89 : f32 to vector<8x32xf32>
    %290 = arith.addf %289, %288 : vector<8x32xf32>
    %291 = arith.divf %289, %290 : vector<8x32xf32>
    %292 = vector.extract_strided_slice %279 {offsets = [0, 64], sizes = [8, 32], strides = [1, 1]} : vector<8x128xf32> to vector<8x32xf32>
    %293 = math.tanh %292 : vector<8x32xf32>
    %294 = vector.extract_strided_slice %279 {offsets = [0, 96], sizes = [8, 32], strides = [1, 1]} : vector<8x128xf32> to vector<8x32xf32>
    %295 = arith.negf %294 : vector<8x32xf32>
    %296 = math.exp %295 : vector<8x32xf32>
    %cst_90 = arith.constant 1.000000e+00 : f32
    %297 = vector.broadcast %cst_90 : f32 to vector<8x32xf32>
    %298 = arith.addf %297, %296 : vector<8x32xf32>
    %299 = arith.divf %297, %298 : vector<8x32xf32>
    %300 = arith.mulf %291, %219 : vector<8x32xf32>
    %301 = arith.mulf %285, %293 : vector<8x32xf32>
    %302 = arith.addf %300, %301 : vector<8x32xf32>
    %303 = math.tanh %302 : vector<8x32xf32>
    %304 = arith.mulf %299, %303 : vector<8x32xf32>
    %305 = arith.index_cast %269 : i32 to index
    %c0_91 = arith.constant 0 : index
    %c0_92 = arith.constant 0 : index
    %306 = vector.load %arg10[%305, %c0_91, %c0_92] : memref<8x8x128xf32, #tpu.memory_space<vmem>>, vector<1x8x128xf32>
    %307 = vector.shape_cast %306 : vector<1x8x128xf32> to vector<8x128xf32>
    %308 = arith.addf %307, %275 : vector<8x128xf32>
    %309 = vector.extract_strided_slice %308 {offsets = [0, 0], sizes = [8, 32], strides = [1, 1]} : vector<8x128xf32> to vector<8x32xf32>
    %310 = arith.negf %309 : vector<8x32xf32>
    %311 = math.exp %310 : vector<8x32xf32>
    %cst_93 = arith.constant 1.000000e+00 : f32
    %312 = vector.broadcast %cst_93 : f32 to vector<8x32xf32>
    %313 = arith.addf %312, %311 : vector<8x32xf32>
    %314 = arith.divf %312, %313 : vector<8x32xf32>
    %315 = vector.extract_strided_slice %308 {offsets = [0, 32], sizes = [8, 32], strides = [1, 1]} : vector<8x128xf32> to vector<8x32xf32>
    %316 = arith.negf %315 : vector<8x32xf32>
    %317 = math.exp %316 : vector<8x32xf32>
    %cst_94 = arith.constant 1.000000e+00 : f32
    %318 = vector.broadcast %cst_94 : f32 to vector<8x32xf32>
    %319 = arith.addf %318, %317 : vector<8x32xf32>
    %320 = arith.divf %318, %319 : vector<8x32xf32>
    %321 = vector.extract_strided_slice %308 {offsets = [0, 64], sizes = [8, 32], strides = [1, 1]} : vector<8x128xf32> to vector<8x32xf32>
    %322 = math.tanh %321 : vector<8x32xf32>
    %323 = vector.extract_strided_slice %308 {offsets = [0, 96], sizes = [8, 32], strides = [1, 1]} : vector<8x128xf32> to vector<8x32xf32>
    %324 = arith.negf %323 : vector<8x32xf32>
    %325 = math.exp %324 : vector<8x32xf32>
    %cst_95 = arith.constant 1.000000e+00 : f32
    %326 = vector.broadcast %cst_95 : f32 to vector<8x32xf32>
    %327 = arith.addf %326, %325 : vector<8x32xf32>
    %328 = arith.divf %326, %327 : vector<8x32xf32>
    %329 = arith.mulf %320, %248 : vector<8x32xf32>
    %330 = arith.mulf %314, %322 : vector<8x32xf32>
    %331 = arith.addf %329, %330 : vector<8x32xf32>
    %332 = math.tanh %331 : vector<8x32xf32>
    %333 = arith.mulf %328, %332 : vector<8x32xf32>
    %334 = arith.index_cast %c3_i32 : i32 to index
    %c0_96 = arith.constant 0 : index
    %c0_97 = arith.constant 0 : index
    %335 = vector.load %arg7[%334, %c0_96, %c0_97] : memref<8x8x64xf32, #tpu.memory_space<vmem>>, vector<1x8x32xf32>
    %336 = vector.shape_cast %335 : vector<1x8x32xf32> to vector<8x32xf32>
    %337 = vector.shape_cast %304 : vector<8x32xf32> to vector<1x8x32xf32>
    tpu.vector_store %arg7[%334, %c0_96, %c0_97], %337 {strides = array<i32>} : memref<8x8x64xf32, #tpu.memory_space<vmem>>, vector<1x8x32xf32>,
    %338 = arith.index_cast %269 : i32 to index
    %c0_98 = arith.constant 0 : index
    %c32_99 = arith.constant 32 : index
    %339 = vector.load %arg7[%338, %c0_98, %c32_99] : memref<8x8x64xf32, #tpu.memory_space<vmem>>, vector<1x8x32xf32>
    %340 = vector.shape_cast %339 : vector<1x8x32xf32> to vector<8x32xf32>
    %341 = vector.shape_cast %333 : vector<8x32xf32> to vector<1x8x32xf32>
    tpu.vector_store %arg7[%338, %c0_98, %c32_99], %341 {strides = array<i32>} : memref<8x8x64xf32, #tpu.memory_space<vmem>>, vector<1x8x32xf32>,
    %342 = vector.broadcast %c3_i32 : i32 to vector<8x1xi32>
    %343 = arith.cmpi eq, %18, %342 : vector<8x1xi32>
    %344 = vector.shape_cast %343 : vector<8x1xi1> to vector<8x1xi1>
    %345 = vector.broadcast %344 : vector<8x1xi1> to vector<8x32xi1>
    %346 = arith.select %345, %304, %263 : vector<8x32xi1>, vector<8x32xf32>
    %347 = vector.broadcast %269 : i32 to vector<8x1xi32>
    %348 = arith.cmpi eq, %18, %347 : vector<8x1xi32>
    %349 = vector.shape_cast %348 : vector<8x1xi1> to vector<8x1xi1>
    %350 = vector.broadcast %349 : vector<8x1xi1> to vector<8x32xi1>
    %351 = arith.select %350, %333, %268 : vector<8x32xi1>, vector<8x32xf32>
    %c4_i32 = arith.constant 4 : i32
    %c7_i32_100 = arith.constant 7 : i32
    %352 = arith.subi %c7_i32_100, %c4_i32 : i32
    %353 = arith.truncf %304 : vector<8x32xf32> to vector<8x32xbf16>
    %c0_101 = arith.constant 0 : index
    %c0_102 = arith.constant 0 : index
    %354 = vector.load %arg3[%c0_101, %c0_102] : memref<32x128xbf16, #tpu.memory_space<vmem>>, vector<32x128xbf16>
    %cst_103 = arith.constant dense<0.000000e+00> : vector<8x128xf32>
    %355 = tpu.matmul %353, %354, %cst_103 {dimension_numbers = #tpu.dot_dimension_numbers<[1], [0], [0], [1], [0, 0, 1, 1], [], []>} : vector<8x32xbf16>, vector<32x128xbf16>, vector<8x128xf32> -> vector<8x128xf32>
    %356 = arith.truncf %333 : vector<8x32xf32> to vector<8x32xbf16>
    %c0_104 = arith.constant 0 : index
    %c0_105 = arith.constant 0 : index
    %357 = vector.load %arg4[%c0_104, %c0_105] : memref<32x128xbf16, #tpu.memory_space<vmem>>, vector<32x128xbf16>
    %cst_106 = arith.constant dense<0.000000e+00> : vector<8x128xf32>
    %358 = tpu.matmul %356, %357, %cst_106 {dimension_numbers = #tpu.dot_dimension_numbers<[1], [0], [0], [1], [0, 0, 1, 1], [], []>} : vector<8x32xbf16>, vector<32x128xbf16>, vector<8x128xf32> -> vector<8x128xf32>
    %359 = arith.index_cast %c4_i32 : i32 to index
    %c0_107 = arith.constant 0 : index
    %c0_108 = arith.constant 0 : index
    %360 = vector.load %arg9[%359, %c0_107, %c0_108] : memref<8x8x128xf32, #tpu.memory_space<vmem>>, vector<1x8x128xf32>
    %361 = vector.shape_cast %360 : vector<1x8x128xf32> to vector<8x128xf32>
    %362 = arith.addf %361, %355 : vector<8x128xf32>
    %363 = vector.extract_strided_slice %362 {offsets = [0, 0], sizes = [8, 32], strides = [1, 1]} : vector<8x128xf32> to vector<8x32xf32>
    %364 = arith.negf %363 : vector<8x32xf32>
    %365 = math.exp %364 : vector<8x32xf32>
    %cst_109 = arith.constant 1.000000e+00 : f32
    %366 = vector.broadcast %cst_109 : f32 to vector<8x32xf32>
    %367 = arith.addf %366, %365 : vector<8x32xf32>
    %368 = arith.divf %366, %367 : vector<8x32xf32>
    %369 = vector.extract_strided_slice %362 {offsets = [0, 32], sizes = [8, 32], strides = [1, 1]} : vector<8x128xf32> to vector<8x32xf32>
    %370 = arith.negf %369 : vector<8x32xf32>
    %371 = math.exp %370 : vector<8x32xf32>
    %cst_110 = arith.constant 1.000000e+00 : f32
    %372 = vector.broadcast %cst_110 : f32 to vector<8x32xf32>
    %373 = arith.addf %372, %371 : vector<8x32xf32>
    %374 = arith.divf %372, %373 : vector<8x32xf32>
    %375 = vector.extract_strided_slice %362 {offsets = [0, 64], sizes = [8, 32], strides = [1, 1]} : vector<8x128xf32> to vector<8x32xf32>
    %376 = math.tanh %375 : vector<8x32xf32>
    %377 = vector.extract_strided_slice %362 {offsets = [0, 96], sizes = [8, 32], strides = [1, 1]} : vector<8x128xf32> to vector<8x32xf32>
    %378 = arith.negf %377 : vector<8x32xf32>
    %379 = math.exp %378 : vector<8x32xf32>
    %cst_111 = arith.constant 1.000000e+00 : f32
    %380 = vector.broadcast %cst_111 : f32 to vector<8x32xf32>
    %381 = arith.addf %380, %379 : vector<8x32xf32>
    %382 = arith.divf %380, %381 : vector<8x32xf32>
    %383 = arith.mulf %374, %302 : vector<8x32xf32>
    %384 = arith.mulf %368, %376 : vector<8x32xf32>
    %385 = arith.addf %383, %384 : vector<8x32xf32>
    %386 = math.tanh %385 : vector<8x32xf32>
    %387 = arith.mulf %382, %386 : vector<8x32xf32>
    %388 = arith.index_cast %352 : i32 to index
    %c0_112 = arith.constant 0 : index
    %c0_113 = arith.constant 0 : index
    %389 = vector.load %arg10[%388, %c0_112, %c0_113] : memref<8x8x128xf32, #tpu.memory_space<vmem>>, vector<1x8x128xf32>
    %390 = vector.shape_cast %389 : vector<1x8x128xf32> to vector<8x128xf32>
    %391 = arith.addf %390, %358 : vector<8x128xf32>
    %392 = vector.extract_strided_slice %391 {offsets = [0, 0], sizes = [8, 32], strides = [1, 1]} : vector<8x128xf32> to vector<8x32xf32>
    %393 = arith.negf %392 : vector<8x32xf32>
    %394 = math.exp %393 : vector<8x32xf32>
    %cst_114 = arith.constant 1.000000e+00 : f32
    %395 = vector.broadcast %cst_114 : f32 to vector<8x32xf32>
    %396 = arith.addf %395, %394 : vector<8x32xf32>
    %397 = arith.divf %395, %396 : vector<8x32xf32>
    %398 = vector.extract_strided_slice %391 {offsets = [0, 32], sizes = [8, 32], strides = [1, 1]} : vector<8x128xf32> to vector<8x32xf32>
    %399 = arith.negf %398 : vector<8x32xf32>
    %400 = math.exp %399 : vector<8x32xf32>
    %cst_115 = arith.constant 1.000000e+00 : f32
    %401 = vector.broadcast %cst_115 : f32 to vector<8x32xf32>
    %402 = arith.addf %401, %400 : vector<8x32xf32>
    %403 = arith.divf %401, %402 : vector<8x32xf32>
    %404 = vector.extract_strided_slice %391 {offsets = [0, 64], sizes = [8, 32], strides = [1, 1]} : vector<8x128xf32> to vector<8x32xf32>
    %405 = math.tanh %404 : vector<8x32xf32>
    %406 = vector.extract_strided_slice %391 {offsets = [0, 96], sizes = [8, 32], strides = [1, 1]} : vector<8x128xf32> to vector<8x32xf32>
    %407 = arith.negf %406 : vector<8x32xf32>
    %408 = math.exp %407 : vector<8x32xf32>
    %cst_116 = arith.constant 1.000000e+00 : f32
    %409 = vector.broadcast %cst_116 : f32 to vector<8x32xf32>
    %410 = arith.addf %409, %408 : vector<8x32xf32>
    %411 = arith.divf %409, %410 : vector<8x32xf32>
    %412 = arith.mulf %403, %331 : vector<8x32xf32>
    %413 = arith.mulf %397, %405 : vector<8x32xf32>
    %414 = arith.addf %412, %413 : vector<8x32xf32>
    %415 = math.tanh %414 : vector<8x32xf32>
    %416 = arith.mulf %411, %415 : vector<8x32xf32>
    %417 = arith.index_cast %c4_i32 : i32 to index
    %c0_117 = arith.constant 0 : index
    %c0_118 = arith.constant 0 : index
    %418 = vector.load %arg7[%417, %c0_117, %c0_118] : memref<8x8x64xf32, #tpu.memory_space<vmem>>, vector<1x8x32xf32>
    %419 = vector.shape_cast %418 : vector<1x8x32xf32> to vector<8x32xf32>
    %420 = vector.shape_cast %387 : vector<8x32xf32> to vector<1x8x32xf32>
    tpu.vector_store %arg7[%417, %c0_117, %c0_118], %420 {strides = array<i32>} : memref<8x8x64xf32, #tpu.memory_space<vmem>>, vector<1x8x32xf32>,
    %421 = arith.index_cast %352 : i32 to index
    %c0_119 = arith.constant 0 : index
    %c32_120 = arith.constant 32 : index
    %422 = vector.load %arg7[%421, %c0_119, %c32_120] : memref<8x8x64xf32, #tpu.memory_space<vmem>>, vector<1x8x32xf32>
    %423 = vector.shape_cast %422 : vector<1x8x32xf32> to vector<8x32xf32>
    %424 = vector.shape_cast %416 : vector<8x32xf32> to vector<1x8x32xf32>
    tpu.vector_store %arg7[%421, %c0_119, %c32_120], %424 {strides = array<i32>} : memref<8x8x64xf32, #tpu.memory_space<vmem>>, vector<1x8x32xf32>,
    %425 = vector.broadcast %c4_i32 : i32 to vector<8x1xi32>
    %426 = arith.cmpi eq, %18, %425 : vector<8x1xi32>
    %427 = vector.shape_cast %426 : vector<8x1xi1> to vector<8x1xi1>
    %428 = vector.broadcast %427 : vector<8x1xi1> to vector<8x32xi1>
    %429 = arith.select %428, %387, %346 : vector<8x32xi1>, vector<8x32xf32>
    %430 = vector.broadcast %352 : i32 to vector<8x1xi32>
    %431 = arith.cmpi eq, %18, %430 : vector<8x1xi32>
    %432 = vector.shape_cast %431 : vector<8x1xi1> to vector<8x1xi1>
    %433 = vector.broadcast %432 : vector<8x1xi1> to vector<8x32xi1>
    %434 = arith.select %433, %416, %351 : vector<8x32xi1>, vector<8x32xf32>
    %c5_i32 = arith.constant 5 : i32
    %c7_i32_121 = arith.constant 7 : i32
    %435 = arith.subi %c7_i32_121, %c5_i32 : i32
    %436 = arith.truncf %387 : vector<8x32xf32> to vector<8x32xbf16>
    %c0_122 = arith.constant 0 : index
    %c0_123 = arith.constant 0 : index
    %437 = vector.load %arg3[%c0_122, %c0_123] : memref<32x128xbf16, #tpu.memory_space<vmem>>, vector<32x128xbf16>
    %cst_124 = arith.constant dense<0.000000e+00> : vector<8x128xf32>
    %438 = tpu.matmul %436, %437, %cst_124 {dimension_numbers = #tpu.dot_dimension_numbers<[1], [0], [0], [1], [0, 0, 1, 1], [], []>} : vector<8x32xbf16>, vector<32x128xbf16>, vector<8x128xf32> -> vector<8x128xf32>
    %439 = arith.truncf %416 : vector<8x32xf32> to vector<8x32xbf16>
    %c0_125 = arith.constant 0 : index
    %c0_126 = arith.constant 0 : index
    %440 = vector.load %arg4[%c0_125, %c0_126] : memref<32x128xbf16, #tpu.memory_space<vmem>>, vector<32x128xbf16>
    %cst_127 = arith.constant dense<0.000000e+00> : vector<8x128xf32>
    %441 = tpu.matmul %439, %440, %cst_127 {dimension_numbers = #tpu.dot_dimension_numbers<[1], [0], [0], [1], [0, 0, 1, 1], [], []>} : vector<8x32xbf16>, vector<32x128xbf16>, vector<8x128xf32> -> vector<8x128xf32>
    %442 = arith.index_cast %c5_i32 : i32 to index
    %c0_128 = arith.constant 0 : index
    %c0_129 = arith.constant 0 : index
    %443 = vector.load %arg9[%442, %c0_128, %c0_129] : memref<8x8x128xf32, #tpu.memory_space<vmem>>, vector<1x8x128xf32>
    %444 = vector.shape_cast %443 : vector<1x8x128xf32> to vector<8x128xf32>
    %445 = arith.addf %444, %438 : vector<8x128xf32>
    %446 = vector.extract_strided_slice %445 {offsets = [0, 0], sizes = [8, 32], strides = [1, 1]} : vector<8x128xf32> to vector<8x32xf32>
    %447 = arith.negf %446 : vector<8x32xf32>
    %448 = math.exp %447 : vector<8x32xf32>
    %cst_130 = arith.constant 1.000000e+00 : f32
    %449 = vector.broadcast %cst_130 : f32 to vector<8x32xf32>
    %450 = arith.addf %449, %448 : vector<8x32xf32>
    %451 = arith.divf %449, %450 : vector<8x32xf32>
    %452 = vector.extract_strided_slice %445 {offsets = [0, 32], sizes = [8, 32], strides = [1, 1]} : vector<8x128xf32> to vector<8x32xf32>
    %453 = arith.negf %452 : vector<8x32xf32>
    %454 = math.exp %453 : vector<8x32xf32>
    %cst_131 = arith.constant 1.000000e+00 : f32
    %455 = vector.broadcast %cst_131 : f32 to vector<8x32xf32>
    %456 = arith.addf %455, %454 : vector<8x32xf32>
    %457 = arith.divf %455, %456 : vector<8x32xf32>
    %458 = vector.extract_strided_slice %445 {offsets = [0, 64], sizes = [8, 32], strides = [1, 1]} : vector<8x128xf32> to vector<8x32xf32>
    %459 = math.tanh %458 : vector<8x32xf32>
    %460 = vector.extract_strided_slice %445 {offsets = [0, 96], sizes = [8, 32], strides = [1, 1]} : vector<8x128xf32> to vector<8x32xf32>
    %461 = arith.negf %460 : vector<8x32xf32>
    %462 = math.exp %461 : vector<8x32xf32>
    %cst_132 = arith.constant 1.000000e+00 : f32
    %463 = vector.broadcast %cst_132 : f32 to vector<8x32xf32>
    %464 = arith.addf %463, %462 : vector<8x32xf32>
    %465 = arith.divf %463, %464 : vector<8x32xf32>
    %466 = arith.mulf %457, %385 : vector<8x32xf32>
    %467 = arith.mulf %451, %459 : vector<8x32xf32>
    %468 = arith.addf %466, %467 : vector<8x32xf32>
    %469 = math.tanh %468 : vector<8x32xf32>
    %470 = arith.mulf %465, %469 : vector<8x32xf32>
    %471 = arith.index_cast %435 : i32 to index
    %c0_133 = arith.constant 0 : index
    %c0_134 = arith.constant 0 : index
    %472 = vector.load %arg10[%471, %c0_133, %c0_134] : memref<8x8x128xf32, #tpu.memory_space<vmem>>, vector<1x8x128xf32>
    %473 = vector.shape_cast %472 : vector<1x8x128xf32> to vector<8x128xf32>
    %474 = arith.addf %473, %441 : vector<8x128xf32>
    %475 = vector.extract_strided_slice %474 {offsets = [0, 0], sizes = [8, 32], strides = [1, 1]} : vector<8x128xf32> to vector<8x32xf32>
    %476 = arith.negf %475 : vector<8x32xf32>
    %477 = math.exp %476 : vector<8x32xf32>
    %cst_135 = arith.constant 1.000000e+00 : f32
    %478 = vector.broadcast %cst_135 : f32 to vector<8x32xf32>
    %479 = arith.addf %478, %477 : vector<8x32xf32>
    %480 = arith.divf %478, %479 : vector<8x32xf32>
    %481 = vector.extract_strided_slice %474 {offsets = [0, 32], sizes = [8, 32], strides = [1, 1]} : vector<8x128xf32> to vector<8x32xf32>
    %482 = arith.negf %481 : vector<8x32xf32>
    %483 = math.exp %482 : vector<8x32xf32>
    %cst_136 = arith.constant 1.000000e+00 : f32
    %484 = vector.broadcast %cst_136 : f32 to vector<8x32xf32>
    %485 = arith.addf %484, %483 : vector<8x32xf32>
    %486 = arith.divf %484, %485 : vector<8x32xf32>
    %487 = vector.extract_strided_slice %474 {offsets = [0, 64], sizes = [8, 32], strides = [1, 1]} : vector<8x128xf32> to vector<8x32xf32>
    %488 = math.tanh %487 : vector<8x32xf32>
    %489 = vector.extract_strided_slice %474 {offsets = [0, 96], sizes = [8, 32], strides = [1, 1]} : vector<8x128xf32> to vector<8x32xf32>
    %490 = arith.negf %489 : vector<8x32xf32>
    %491 = math.exp %490 : vector<8x32xf32>
    %cst_137 = arith.constant 1.000000e+00 : f32
    %492 = vector.broadcast %cst_137 : f32 to vector<8x32xf32>
    %493 = arith.addf %492, %491 : vector<8x32xf32>
    %494 = arith.divf %492, %493 : vector<8x32xf32>
    %495 = arith.mulf %486, %414 : vector<8x32xf32>
    %496 = arith.mulf %480, %488 : vector<8x32xf32>
    %497 = arith.addf %495, %496 : vector<8x32xf32>
    %498 = math.tanh %497 : vector<8x32xf32>
    %499 = arith.mulf %494, %498 : vector<8x32xf32>
    %500 = arith.index_cast %c5_i32 : i32 to index
    %c0_138 = arith.constant 0 : index
    %c0_139 = arith.constant 0 : index
    %501 = vector.load %arg7[%500, %c0_138, %c0_139] : memref<8x8x64xf32, #tpu.memory_space<vmem>>, vector<1x8x32xf32>
    %502 = vector.shape_cast %501 : vector<1x8x32xf32> to vector<8x32xf32>
    %503 = vector.shape_cast %470 : vector<8x32xf32> to vector<1x8x32xf32>
    tpu.vector_store %arg7[%500, %c0_138, %c0_139], %503 {strides = array<i32>} : memref<8x8x64xf32, #tpu.memory_space<vmem>>, vector<1x8x32xf32>,
    %504 = arith.index_cast %435 : i32 to index
    %c0_140 = arith.constant 0 : index
    %c32_141 = arith.constant 32 : index
    %505 = vector.load %arg7[%504, %c0_140, %c32_141] : memref<8x8x64xf32, #tpu.memory_space<vmem>>, vector<1x8x32xf32>
    %506 = vector.shape_cast %505 : vector<1x8x32xf32> to vector<8x32xf32>
    %507 = vector.shape_cast %499 : vector<8x32xf32> to vector<1x8x32xf32>
    tpu.vector_store %arg7[%504, %c0_140, %c32_141], %507 {strides = array<i32>} : memref<8x8x64xf32, #tpu.memory_space<vmem>>, vector<1x8x32xf32>,
    %508 = vector.broadcast %c5_i32 : i32 to vector<8x1xi32>
    %509 = arith.cmpi eq, %18, %508 : vector<8x1xi32>
    %510 = vector.shape_cast %509 : vector<8x1xi1> to vector<8x1xi1>
    %511 = vector.broadcast %510 : vector<8x1xi1> to vector<8x32xi1>
    %512 = arith.select %511, %470, %429 : vector<8x32xi1>, vector<8x32xf32>
    %513 = vector.broadcast %435 : i32 to vector<8x1xi32>
    %514 = arith.cmpi eq, %18, %513 : vector<8x1xi32>
    %515 = vector.shape_cast %514 : vector<8x1xi1> to vector<8x1xi1>
    %516 = vector.broadcast %515 : vector<8x1xi1> to vector<8x32xi1>
    %517 = arith.select %516, %499, %434 : vector<8x32xi1>, vector<8x32xf32>
    %c6_i32 = arith.constant 6 : i32
    %c7_i32_142 = arith.constant 7 : i32
    %518 = arith.subi %c7_i32_142, %c6_i32 : i32
    %519 = arith.truncf %470 : vector<8x32xf32> to vector<8x32xbf16>
    %c0_143 = arith.constant 0 : index
    %c0_144 = arith.constant 0 : index
    %520 = vector.load %arg3[%c0_143, %c0_144] : memref<32x128xbf16, #tpu.memory_space<vmem>>, vector<32x128xbf16>
    %cst_145 = arith.constant dense<0.000000e+00> : vector<8x128xf32>
    %521 = tpu.matmul %519, %520, %cst_145 {dimension_numbers = #tpu.dot_dimension_numbers<[1], [0], [0], [1], [0, 0, 1, 1], [], []>} : vector<8x32xbf16>, vector<32x128xbf16>, vector<8x128xf32> -> vector<8x128xf32>
    %522 = arith.truncf %499 : vector<8x32xf32> to vector<8x32xbf16>
    %c0_146 = arith.constant 0 : index
    %c0_147 = arith.constant 0 : index
    %523 = vector.load %arg4[%c0_146, %c0_147] : memref<32x128xbf16, #tpu.memory_space<vmem>>, vector<32x128xbf16>
    %cst_148 = arith.constant dense<0.000000e+00> : vector<8x128xf32>
    %524 = tpu.matmul %522, %523, %cst_148 {dimension_numbers = #tpu.dot_dimension_numbers<[1], [0], [0], [1], [0, 0, 1, 1], [], []>} : vector<8x32xbf16>, vector<32x128xbf16>, vector<8x128xf32> -> vector<8x128xf32>
    %525 = arith.index_cast %c6_i32 : i32 to index
    %c0_149 = arith.constant 0 : index
    %c0_150 = arith.constant 0 : index
    %526 = vector.load %arg9[%525, %c0_149, %c0_150] : memref<8x8x128xf32, #tpu.memory_space<vmem>>, vector<1x8x128xf32>
    %527 = vector.shape_cast %526 : vector<1x8x128xf32> to vector<8x128xf32>
    %528 = arith.addf %527, %521 : vector<8x128xf32>
    %529 = vector.extract_strided_slice %528 {offsets = [0, 0], sizes = [8, 32], strides = [1, 1]} : vector<8x128xf32> to vector<8x32xf32>
    %530 = arith.negf %529 : vector<8x32xf32>
    %531 = math.exp %530 : vector<8x32xf32>
    %cst_151 = arith.constant 1.000000e+00 : f32
    %532 = vector.broadcast %cst_151 : f32 to vector<8x32xf32>
    %533 = arith.addf %532, %531 : vector<8x32xf32>
    %534 = arith.divf %532, %533 : vector<8x32xf32>
    %535 = vector.extract_strided_slice %528 {offsets = [0, 32], sizes = [8, 32], strides = [1, 1]} : vector<8x128xf32> to vector<8x32xf32>
    %536 = arith.negf %535 : vector<8x32xf32>
    %537 = math.exp %536 : vector<8x32xf32>
    %cst_152 = arith.constant 1.000000e+00 : f32
    %538 = vector.broadcast %cst_152 : f32 to vector<8x32xf32>
    %539 = arith.addf %538, %537 : vector<8x32xf32>
    %540 = arith.divf %538, %539 : vector<8x32xf32>
    %541 = vector.extract_strided_slice %528 {offsets = [0, 64], sizes = [8, 32], strides = [1, 1]} : vector<8x128xf32> to vector<8x32xf32>
    %542 = math.tanh %541 : vector<8x32xf32>
    %543 = vector.extract_strided_slice %528 {offsets = [0, 96], sizes = [8, 32], strides = [1, 1]} : vector<8x128xf32> to vector<8x32xf32>
    %544 = arith.negf %543 : vector<8x32xf32>
    %545 = math.exp %544 : vector<8x32xf32>
    %cst_153 = arith.constant 1.000000e+00 : f32
    %546 = vector.broadcast %cst_153 : f32 to vector<8x32xf32>
    %547 = arith.addf %546, %545 : vector<8x32xf32>
    %548 = arith.divf %546, %547 : vector<8x32xf32>
    %549 = arith.mulf %540, %468 : vector<8x32xf32>
    %550 = arith.mulf %534, %542 : vector<8x32xf32>
    %551 = arith.addf %549, %550 : vector<8x32xf32>
    %552 = math.tanh %551 : vector<8x32xf32>
    %553 = arith.mulf %548, %552 : vector<8x32xf32>
    %554 = arith.index_cast %518 : i32 to index
    %c0_154 = arith.constant 0 : index
    %c0_155 = arith.constant 0 : index
    %555 = vector.load %arg10[%554, %c0_154, %c0_155] : memref<8x8x128xf32, #tpu.memory_space<vmem>>, vector<1x8x128xf32>
    %556 = vector.shape_cast %555 : vector<1x8x128xf32> to vector<8x128xf32>
    %557 = arith.addf %556, %524 : vector<8x128xf32>
    %558 = vector.extract_strided_slice %557 {offsets = [0, 0], sizes = [8, 32], strides = [1, 1]} : vector<8x128xf32> to vector<8x32xf32>
    %559 = arith.negf %558 : vector<8x32xf32>
    %560 = math.exp %559 : vector<8x32xf32>
    %cst_156 = arith.constant 1.000000e+00 : f32
    %561 = vector.broadcast %cst_156 : f32 to vector<8x32xf32>
    %562 = arith.addf %561, %560 : vector<8x32xf32>
    %563 = arith.divf %561, %562 : vector<8x32xf32>
    %564 = vector.extract_strided_slice %557 {offsets = [0, 32], sizes = [8, 32], strides = [1, 1]} : vector<8x128xf32> to vector<8x32xf32>
    %565 = arith.negf %564 : vector<8x32xf32>
    %566 = math.exp %565 : vector<8x32xf32>
    %cst_157 = arith.constant 1.000000e+00 : f32
    %567 = vector.broadcast %cst_157 : f32 to vector<8x32xf32>
    %568 = arith.addf %567, %566 : vector<8x32xf32>
    %569 = arith.divf %567, %568 : vector<8x32xf32>
    %570 = vector.extract_strided_slice %557 {offsets = [0, 64], sizes = [8, 32], strides = [1, 1]} : vector<8x128xf32> to vector<8x32xf32>
    %571 = math.tanh %570 : vector<8x32xf32>
    %572 = vector.extract_strided_slice %557 {offsets = [0, 96], sizes = [8, 32], strides = [1, 1]} : vector<8x128xf32> to vector<8x32xf32>
    %573 = arith.negf %572 : vector<8x32xf32>
    %574 = math.exp %573 : vector<8x32xf32>
    %cst_158 = arith.constant 1.000000e+00 : f32
    %575 = vector.broadcast %cst_158 : f32 to vector<8x32xf32>
    %576 = arith.addf %575, %574 : vector<8x32xf32>
    %577 = arith.divf %575, %576 : vector<8x32xf32>
    %578 = arith.mulf %569, %497 : vector<8x32xf32>
    %579 = arith.mulf %563, %571 : vector<8x32xf32>
    %580 = arith.addf %578, %579 : vector<8x32xf32>
    %581 = math.tanh %580 : vector<8x32xf32>
    %582 = arith.mulf %577, %581 : vector<8x32xf32>
    %583 = arith.index_cast %c6_i32 : i32 to index
    %c0_159 = arith.constant 0 : index
    %c0_160 = arith.constant 0 : index
    %584 = vector.load %arg7[%583, %c0_159, %c0_160] : memref<8x8x64xf32, #tpu.memory_space<vmem>>, vector<1x8x32xf32>
    %585 = vector.shape_cast %584 : vector<1x8x32xf32> to vector<8x32xf32>
    %586 = vector.shape_cast %553 : vector<8x32xf32> to vector<1x8x32xf32>
    tpu.vector_store %arg7[%583, %c0_159, %c0_160], %586 {strides = array<i32>} : memref<8x8x64xf32, #tpu.memory_space<vmem>>, vector<1x8x32xf32>,
    %587 = arith.index_cast %518 : i32 to index
    %c0_161 = arith.constant 0 : index
    %c32_162 = arith.constant 32 : index
    %588 = vector.load %arg7[%587, %c0_161, %c32_162] : memref<8x8x64xf32, #tpu.memory_space<vmem>>, vector<1x8x32xf32>
    %589 = vector.shape_cast %588 : vector<1x8x32xf32> to vector<8x32xf32>
    %590 = vector.shape_cast %582 : vector<8x32xf32> to vector<1x8x32xf32>
    tpu.vector_store %arg7[%587, %c0_161, %c32_162], %590 {strides = array<i32>} : memref<8x8x64xf32, #tpu.memory_space<vmem>>, vector<1x8x32xf32>,
    %591 = vector.broadcast %c6_i32 : i32 to vector<8x1xi32>
    %592 = arith.cmpi eq, %18, %591 : vector<8x1xi32>
    %593 = vector.shape_cast %592 : vector<8x1xi1> to vector<8x1xi1>
    %594 = vector.broadcast %593 : vector<8x1xi1> to vector<8x32xi1>
    %595 = arith.select %594, %553, %512 : vector<8x32xi1>, vector<8x32xf32>
    %596 = vector.broadcast %518 : i32 to vector<8x1xi32>
    %597 = arith.cmpi eq, %18, %596 : vector<8x1xi32>
    %598 = vector.shape_cast %597 : vector<8x1xi1> to vector<8x1xi1>
    %599 = vector.broadcast %598 : vector<8x1xi1> to vector<8x32xi1>
    %600 = arith.select %599, %582, %517 : vector<8x32xi1>, vector<8x32xf32>
    %c7_i32_163 = arith.constant 7 : i32
    %c7_i32_164 = arith.constant 7 : i32
    %601 = arith.subi %c7_i32_164, %c7_i32_163 : i32
    %602 = arith.truncf %553 : vector<8x32xf32> to vector<8x32xbf16>
    %c0_165 = arith.constant 0 : index
    %c0_166 = arith.constant 0 : index
    %603 = vector.load %arg3[%c0_165, %c0_166] : memref<32x128xbf16, #tpu.memory_space<vmem>>, vector<32x128xbf16>
    %cst_167 = arith.constant dense<0.000000e+00> : vector<8x128xf32>
    %604 = tpu.matmul %602, %603, %cst_167 {dimension_numbers = #tpu.dot_dimension_numbers<[1], [0], [0], [1], [0, 0, 1, 1], [], []>} : vector<8x32xbf16>, vector<32x128xbf16>, vector<8x128xf32> -> vector<8x128xf32>
    %605 = arith.truncf %582 : vector<8x32xf32> to vector<8x32xbf16>
    %c0_168 = arith.constant 0 : index
    %c0_169 = arith.constant 0 : index
    %606 = vector.load %arg4[%c0_168, %c0_169] : memref<32x128xbf16, #tpu.memory_space<vmem>>, vector<32x128xbf16>
    %cst_170 = arith.constant dense<0.000000e+00> : vector<8x128xf32>
    %607 = tpu.matmul %605, %606, %cst_170 {dimension_numbers = #tpu.dot_dimension_numbers<[1], [0], [0], [1], [0, 0, 1, 1], [], []>} : vector<8x32xbf16>, vector<32x128xbf16>, vector<8x128xf32> -> vector<8x128xf32>
    %608 = arith.index_cast %c7_i32_163 : i32 to index
    %c0_171 = arith.constant 0 : index
    %c0_172 = arith.constant 0 : index
    %609 = vector.load %arg9[%608, %c0_171, %c0_172] : memref<8x8x128xf32, #tpu.memory_space<vmem>>, vector<1x8x128xf32>
    %610 = vector.shape_cast %609 : vector<1x8x128xf32> to vector<8x128xf32>
    %611 = arith.addf %610, %604 : vector<8x128xf32>
    %612 = vector.extract_strided_slice %611 {offsets = [0, 0], sizes = [8, 32], strides = [1, 1]} : vector<8x128xf32> to vector<8x32xf32>
    %613 = arith.negf %612 : vector<8x32xf32>
    %614 = math.exp %613 : vector<8x32xf32>
    %cst_173 = arith.constant 1.000000e+00 : f32
    %615 = vector.broadcast %cst_173 : f32 to vector<8x32xf32>
    %616 = arith.addf %615, %614 : vector<8x32xf32>
    %617 = arith.divf %615, %616 : vector<8x32xf32>
    %618 = vector.extract_strided_slice %611 {offsets = [0, 32], sizes = [8, 32], strides = [1, 1]} : vector<8x128xf32> to vector<8x32xf32>
    %619 = arith.negf %618 : vector<8x32xf32>
    %620 = math.exp %619 : vector<8x32xf32>
    %cst_174 = arith.constant 1.000000e+00 : f32
    %621 = vector.broadcast %cst_174 : f32 to vector<8x32xf32>
    %622 = arith.addf %621, %620 : vector<8x32xf32>
    %623 = arith.divf %621, %622 : vector<8x32xf32>
    %624 = vector.extract_strided_slice %611 {offsets = [0, 64], sizes = [8, 32], strides = [1, 1]} : vector<8x128xf32> to vector<8x32xf32>
    %625 = math.tanh %624 : vector<8x32xf32>
    %626 = vector.extract_strided_slice %611 {offsets = [0, 96], sizes = [8, 32], strides = [1, 1]} : vector<8x128xf32> to vector<8x32xf32>
    %627 = arith.negf %626 : vector<8x32xf32>
    %628 = math.exp %627 : vector<8x32xf32>
    %cst_175 = arith.constant 1.000000e+00 : f32
    %629 = vector.broadcast %cst_175 : f32 to vector<8x32xf32>
    %630 = arith.addf %629, %628 : vector<8x32xf32>
    %631 = arith.divf %629, %630 : vector<8x32xf32>
    %632 = arith.mulf %623, %551 : vector<8x32xf32>
    %633 = arith.mulf %617, %625 : vector<8x32xf32>
    %634 = arith.addf %632, %633 : vector<8x32xf32>
    %635 = math.tanh %634 : vector<8x32xf32>
    %636 = arith.mulf %631, %635 : vector<8x32xf32>
    %637 = arith.index_cast %601 : i32 to index
    %c0_176 = arith.constant 0 : index
    %c0_177 = arith.constant 0 : index
    %638 = vector.load %arg10[%637, %c0_176, %c0_177] : memref<8x8x128xf32, #tpu.memory_space<vmem>>, vector<1x8x128xf32>
    %639 = vector.shape_cast %638 : vector<1x8x128xf32> to vector<8x128xf32>
    %640 = arith.addf %639, %607 : vector<8x128xf32>
    %641 = vector.extract_strided_slice %640 {offsets = [0, 0], sizes = [8, 32], strides = [1, 1]} : vector<8x128xf32> to vector<8x32xf32>
    %642 = arith.negf %641 : vector<8x32xf32>
    %643 = math.exp %642 : vector<8x32xf32>
    %cst_178 = arith.constant 1.000000e+00 : f32
    %644 = vector.broadcast %cst_178 : f32 to vector<8x32xf32>
    %645 = arith.addf %644, %643 : vector<8x32xf32>
    %646 = arith.divf %644, %645 : vector<8x32xf32>
    %647 = vector.extract_strided_slice %640 {offsets = [0, 32], sizes = [8, 32], strides = [1, 1]} : vector<8x128xf32> to vector<8x32xf32>
    %648 = arith.negf %647 : vector<8x32xf32>
    %649 = math.exp %648 : vector<8x32xf32>
    %cst_179 = arith.constant 1.000000e+00 : f32
    %650 = vector.broadcast %cst_179 : f32 to vector<8x32xf32>
    %651 = arith.addf %650, %649 : vector<8x32xf32>
    %652 = arith.divf %650, %651 : vector<8x32xf32>
    %653 = vector.extract_strided_slice %640 {offsets = [0, 64], sizes = [8, 32], strides = [1, 1]} : vector<8x128xf32> to vector<8x32xf32>
    %654 = math.tanh %653 : vector<8x32xf32>
    %655 = vector.extract_strided_slice %640 {offsets = [0, 96], sizes = [8, 32], strides = [1, 1]} : vector<8x128xf32> to vector<8x32xf32>
    %656 = arith.negf %655 : vector<8x32xf32>
    %657 = math.exp %656 : vector<8x32xf32>
    %cst_180 = arith.constant 1.000000e+00 : f32
    %658 = vector.broadcast %cst_180 : f32 to vector<8x32xf32>
    %659 = arith.addf %658, %657 : vector<8x32xf32>
    %660 = arith.divf %658, %659 : vector<8x32xf32>
    %661 = arith.mulf %652, %580 : vector<8x32xf32>
    %662 = arith.mulf %646, %654 : vector<8x32xf32>
    %663 = arith.addf %661, %662 : vector<8x32xf32>
    %664 = math.tanh %663 : vector<8x32xf32>
    %665 = arith.mulf %660, %664 : vector<8x32xf32>
    %666 = arith.index_cast %c7_i32_163 : i32 to index
    %c0_181 = arith.constant 0 : index
    %c0_182 = arith.constant 0 : index
    %667 = vector.load %arg7[%666, %c0_181, %c0_182] : memref<8x8x64xf32, #tpu.memory_space<vmem>>, vector<1x8x32xf32>
    %668 = vector.shape_cast %667 : vector<1x8x32xf32> to vector<8x32xf32>
    %669 = vector.shape_cast %636 : vector<8x32xf32> to vector<1x8x32xf32>
    tpu.vector_store %arg7[%666, %c0_181, %c0_182], %669 {strides = array<i32>} : memref<8x8x64xf32, #tpu.memory_space<vmem>>, vector<1x8x32xf32>,
    %670 = arith.index_cast %601 : i32 to index
    %c0_183 = arith.constant 0 : index
    %c32_184 = arith.constant 32 : index
    %671 = vector.load %arg7[%670, %c0_183, %c32_184] : memref<8x8x64xf32, #tpu.memory_space<vmem>>, vector<1x8x32xf32>
    %672 = vector.shape_cast %671 : vector<1x8x32xf32> to vector<8x32xf32>
    %673 = vector.shape_cast %665 : vector<8x32xf32> to vector<1x8x32xf32>
    tpu.vector_store %arg7[%670, %c0_183, %c32_184], %673 {strides = array<i32>} : memref<8x8x64xf32, #tpu.memory_space<vmem>>, vector<1x8x32xf32>,
    %674 = vector.broadcast %c7_i32_163 : i32 to vector<8x1xi32>
    %675 = arith.cmpi eq, %18, %674 : vector<8x1xi32>
    %676 = vector.shape_cast %675 : vector<8x1xi1> to vector<8x1xi1>
    %677 = vector.broadcast %676 : vector<8x1xi1> to vector<8x32xi1>
    %678 = arith.select %677, %636, %595 : vector<8x32xi1>, vector<8x32xf32>
    %679 = vector.broadcast %601 : i32 to vector<8x1xi32>
    %680 = arith.cmpi eq, %18, %679 : vector<8x1xi32>
    %681 = vector.shape_cast %680 : vector<8x1xi1> to vector<8x1xi1>
    %682 = vector.broadcast %681 : vector<8x1xi1> to vector<8x32xi1>
    %683 = arith.select %682, %665, %600 : vector<8x32xi1>, vector<8x32xf32>
    %c8_i32 = arith.constant 8 : i32
    %c0_185 = arith.constant 0 : index
    %c0_186 = arith.constant 0 : index
    %684 = vector.load %arg8[%c0_185, %c0_186] : memref<8x64xf32, #tpu.memory_space<vmem>>, vector<8x32xf32>
    tpu.vector_store %arg8[%c0_185, %c0_186], %678 {strides = array<i32>} : memref<8x64xf32, #tpu.memory_space<vmem>>, vector<8x32xf32>,
    %c0_187 = arith.constant 0 : index
    %c32_188 = arith.constant 32 : index
    %685 = vector.load %arg8[%c0_187, %c32_188] : memref<8x64xf32, #tpu.memory_space<vmem>>, vector<8x32xf32>
    tpu.vector_store %arg8[%c0_187, %c32_188], %683 {strides = array<i32>} : memref<8x64xf32, #tpu.memory_space<vmem>>, vector<8x32xf32>,
    return
  }
  func.func @transform_0(%arg0: i32) -> (i32, i32, i32) {
    %c0_i32 = arith.constant 0 : i32
    %c0_i32_0 = arith.constant 0 : i32
    %c0_i32_1 = arith.constant 0 : i32
    return %c0_i32, %arg0, %c0_i32_0 : i32, i32, i32
  }
  func.func @transform_1(%arg0: i32) -> (i32, i32) {
    %c0_i32 = arith.constant 0 : i32
    %c0_i32_0 = arith.constant 0 : i32
    %c0_i32_1 = arith.constant 0 : i32
    return %c0_i32, %c0_i32_0 : i32, i32
  }
  func.func @transform_2(%arg0: i32) -> (i32, i32) {
    %c0_i32 = arith.constant 0 : i32
    %c0_i32_0 = arith.constant 0 : i32
    %c0_i32_1 = arith.constant 0 : i32
    return %c0_i32, %c0_i32_0 : i32, i32
  }
  func.func @transform_3(%arg0: i32) -> (i32, i32) {
    %c0_i32 = arith.constant 0 : i32
    %c0_i32_0 = arith.constant 0 : i32
    %c0_i32_1 = arith.constant 0 : i32
    return %c0_i32, %c0_i32_0 : i32, i32
  }
  func.func @transform_4(%arg0: i32) -> (i32, i32) {
    %c0_i32 = arith.constant 0 : i32
    %c0_i32_0 = arith.constant 0 : i32
    %c0_i32_1 = arith.constant 0 : i32
    return %c0_i32, %c0_i32_0 : i32, i32
  }
  func.func @transform_5(%arg0: i32) -> (i32, i32) {
    %c0_i32 = arith.constant 0 : i32
    %c0_i32_0 = arith.constant 0 : i32
    return %arg0, %c0_i32 : i32, i32
  }
  func.func @transform_6(%arg0: i32) -> (i32, i32, i32) {
    %c0_i32 = arith.constant 0 : i32
    %c0_i32_0 = arith.constant 0 : i32
    %c0_i32_1 = arith.constant 0 : i32
    return %c0_i32, %arg0, %c0_i32_0 : i32, i32, i32
  }
  func.func @transform_7(%arg0: i32) -> (i32, i32) {
    %c0_i32 = arith.constant 0 : i32
    %c0_i32_0 = arith.constant 0 : i32
    return %arg0, %c0_i32 : i32, i32
  }
}

</mosaic_0001>

<bundles_post_ra>
// kernel: tpu_custom_call.1
= control target key start
LH: loop header
LB: loop body
LE: loop exit
PB: predicated region body
PF: predicated region fallthrough
CT: control target
= control target key end

     0   :  { %13 = vsyncpa [#allocation5], 0  ;;  %s2998_s0 = inlined_call_operand.hbm [shape: bf16[8,8,32], index: 0, kind: input, shape index: {}]   ;;  %s2999_s1 = inlined_call_operand.hbm [shape: bf16[32,256], index: 1, kind: input, shape index: {}]   ;;  %s3000_s2 = inlined_call_operand.vmem [shape: bf16[32,128], index: 2, kind: input, shape index: {}]   ;;  %s3001_s3 = inlined_call_operand.hbm [shape: bf16[32,128], index: 3, kind: input, shape index: {}]   ;;  %s3002_s4 = inlined_call_operand.vmem [shape: f32[1,256], index: 4, kind: input, shape index: {}]   ;;  %s3003_s5 = inlined_call_operand.vmem [shape: s32[8,1], index: 5, kind: input, shape index: {}]   ;;  %s3004_s6 = inlined_call_operand.hbm [shape: f32[8,8,64], index: 6, kind: output, shape index: {0}]   ;;  %s3005_s7 = inlined_call_operand.hbm [shape: f32[8,64], index: 7, kind: output, shape index: {1}]  }
   0x1   :  { %14 = vsyncpa [#allocation8], 0 }
   0x2   :  { %15 = vsyncpa [#allocation6], 0 }
   0x3   :  { %16 = vsyncpa [#allocation12], 0  ;;  %s2414_s24 = smov [#allocation7]   ;;  %s2296_s28 = scalar_lea.hbm %s2999_s1, 512 }
   0x4   :  { %s34_s25 = sshll.u32 %s2414_s24, 4  ;;  %p2297_p0 = scmp.ne.s32.totalorder %s2999_s1, %s2296_s28  ;;  %s35_s25 = int_to_ptr.vmem [resolvable:$true] %s34_s25 }
   0x5   :  { %p2300_p1 = scmp.lt.u32.totalorder %s2296_s28, %s2999_s1 }
   0x7   :  { %p2302_p2 = pnand %p2300_p1, %p2297_p0 }
   0x9   :  { %2305 = shalt.err (!%p2302_p2)
}
   0xa   :  { %s2306_s10 = scalar_lea.vmem %s35_s25, 512  ;;  %p2311_p4 = scmp.lt.s32.totalorder %s35_s25, %s35_s25 }
   0xb   :  { %p2307_p3 = scmp.ne.s32.totalorder %s35_s25, %s2306_s10  ;;  %p2312_p5 = scmp.lt.s32.totalorder %s2306_s10, %s2306_s10 }
   0xd   :  { %p2313_p6 = por %p2312_p5, %p2311_p4 }
   0xf   :  { %p2314_p7 = pnand %p2313_p6, %p2307_p3 }
  0x11   :  { %2317 = shalt.err (!%p2314_p7)
}
  0x12   :  { %s2415_s11 = smov 128   ;;  %s2416_s12 = smov 8  }
  0x13   :  { %40 = dma.hbm_to_vmem [thread:$0]  %s2999_s1, 512, %s35_s25, [#allocation8], %s2415_s11, %s2415_s11, %s2416_s12  }
  0x14   :  { %s2417_s15 = smov [#allocation4]   ;;  %s2318_s19 = scalar_lea.hbm %s2998_s0, 512 }
  0x15   :  { %s22_s16 = sshll.u32 %s2417_s15, 4  ;;  %p2319_p8 = scmp.ne.s32.totalorder %s2998_s0, %s2318_s19  ;;  %s23_s16 = int_to_ptr.vmem [resolvable:$true] %s22_s16 }
  0x16   :  { %p2322_p9 = scmp.lt.u32.totalorder %s2318_s19, %s2998_s0 }
  0x18   :  { %p2324_p10 = pnand %p2322_p9, %p2319_p8 }
  0x1a   :  { %2327 = shalt.err (!%p2324_p10)
}
  0x1b   :  { %s2328_s24 = scalar_lea.vmem %s23_s16, 512  ;;  %p2333_p12 = scmp.lt.s32.totalorder %s23_s16, %s23_s16 }
  0x1c   :  { %p2329_p11 = scmp.ne.s32.totalorder %s23_s16, %s2328_s24  ;;  %p2334_p13 = scmp.lt.s32.totalorder %s2328_s24, %s2328_s24 }
  0x1e   :  { %p2335_p0 = por %p2334_p13, %p2333_p12 }
  0x20   :  { %p2336_p1 = pnand %p2335_p0, %p2329_p11 }
  0x22   :  { %2339 = shalt.err (!%p2336_p1)
}
  0x23   :  { %s2418_s1 = smov 64   ;;  %s2419_s25 = smov 4  }
  0x24   :  { %28 = dma.hbm_to_vmem [thread:$0]  %s2998_s0, 512, %s23_s16, [#allocation5], %s2418_s1, %s2418_s1, %s2419_s25  }
  0x25   :  { %s2420_s28 = smov [#allocation9]   ;;  %s2340_s9 = scalar_lea.hbm %s3001_s3, 256 }
  0x26   :  { %s48_s29 = sshll.u32 %s2420_s28, 4  ;;  %p2341_p2 = scmp.ne.s32.totalorder %s3001_s3, %s2340_s9  ;;  %s49_s29 = int_to_ptr.vmem [resolvable:$true] %s48_s29 }
  0x27   :  { %p2344_p3 = scmp.lt.u32.totalorder %s2340_s9, %s3001_s3 }
  0x29   :  { %p2346_p4 = pnand %p2344_p3, %p2341_p2 }
  0x2b   :  { %2349 = shalt.err (!%p2346_p4)
}
  0x2c   :  { %s2350_s17 = scalar_lea.vmem %s49_s29, 256  ;;  %p2355_p6 = scmp.lt.s32.totalorder %s49_s29, %s49_s29 }
  0x2d   :  { %p2351_p5 = scmp.ne.s32.totalorder %s49_s29, %s2350_s17  ;;  %p2356_p7 = scmp.lt.s32.totalorder %s2350_s17, %s2350_s17 }
  0x2f   :  { %p2357_p8 = por %p2356_p7, %p2355_p6 }
  0x31   :  { %p2358_p9 = pnand %p2357_p8, %p2351_p5 }
  0x33   :  { %2361 = shalt.err (!%p2358_p9)
}
  0x34   :  { %54 = dma.hbm_to_vmem [thread:$0]  %s3001_s3, 256, %s49_s29, [#allocation8], %s2418_s1, %s2418_s1, %s2419_s25  }
  0x35   :  { %2406 = dma.done.wait [#allocation5], 512  }
  0x36   :  { %2407 = vsyncadd [#allocation5], 4294966784 }
  0x37   :  { %2408 = dma.done.wait [#allocation8], 768  }
  0x38   :  { %2409 = vsyncadd [#allocation8], 4294966528  ;;  %v2421_v0 = vmov 0.0   ;;  %v2422_v1 = vmov 0   ;;  %vm2423_vm0 = vmmov 0   ;;  %v2129_v4 = vld [vmem:[%s3000_s2] sm:$0xff]   ;;  %v83_v14 = vlaneseq }
  0x39   :  { %1983 = vmatprep.subr.bf16.mxu1 %v2421_v0  ;;  %178 = vmatprep.mubr.bf16.mxu0 %v2422_v1  ;;  %v2126_v2 = vld [vmem:[#allocation7 + $0x4] ss:$8 sps:$4 sm:$0xff]   ;;  %v2128_v3 = vld [vmem:[#allocation7] ss:$8 sps:$4 sm:$0xff]   ;;  %v2130_v5 = vld [vmem:[#allocation7 + $0x14] ss:$8 sps:$4 sm:$0xff]  }
  0x3a   :  { %1987 = vmatprep.mubr.msk.bf16.mxu1 %vm2423_vm0, %v2421_v0  ;;  %2124 = vset.pattern.permute.xlu0 %v2422_v1  ;;  %v2132_v6 = vld [vmem:[#allocation7 + $0x10] ss:$8 sps:$4 sm:$0xff]   ;;  %v2133_v7 = vld [vmem:[%s3000_s2 + $0x8] sm:$0xff]   ;;  %v2134_v8 = vld [vmem:[#allocation4] sm:$0xff]   ;;  %vm133_vm1 = vcmask 261120   ;;  %v84_v15 = vshrl.u32 %v83_v14, 7 }
  0x3b   :  { %2125 = vset.pattern.permute.xlu1 %v2422_v1  ;;  %146 = vmatprep.subr.bf16.mxu0 %v2126_v2  ;;  %v2137_v9 = vld [vmem:[#allocation9] sm:$0xff]   ;;  %v2138_v10 = vld [vmem:[#allocation9 + $0x8] sm:$0xff]   ;;  %v2136_v12 = vld [vmem:[#allocation4 + $0x10] sm:$0xff]  }
  0x3c   :  { %147 = vmatpush1.bf16.msra.mxu0 %v2128_v3  ;;  %1984 = vmatpush3.bf16.msra.mxu1 %v2129_v4  ;;  %v2135_v11 = vld [vmem:[#allocation4 + $0x8] sm:$0xff]   ;;  %v2139_v13 = vld [vmem:[#allocation4 + $0x18] sm:$0xff]   ;;  %v85_v16 = vsub.s32 0, %v84_v15  ;;  %v81_v17 = vld [vmem:[%s3002_s4] sm:$0x3]  ;;  %v89_v18 = vsub.s32 1, %v84_v15 }
  0x3d   :  { %148 = vmatprep.subr.bf16.mxu0 %v2130_v5  ;;  %1985 = vmatprep.subr.bf16.mxu1 %v2421_v0  ;;  %s2424_s4 = smov 32  }
  0x3e   :  { %v86_v19 = vrot.slane %v81_v17, %v85_v16  ;;  %v90_v20 = vrot.slane %v81_v17, %v89_v18 }
  0x40   :  { %149 = vmatpush1.bf16.msra.mxu0 %v2132_v6  ;;  %1986 = vmatpush3.bf16.msra.mxu1 %v2133_v7 }
  0x41   :  { %2015 = vmatprep.subr.bf16.mxu0 %v2421_v0  ;;  %1991 = vmatprep.subr.bf16.mxu1 %v2421_v0 }
  0x43   :  { %1868 = vmatmul.mubr.msk.bf16.vlgmr.msra.gmra.mrb[0].mxu0 %vm133_vm1, %v2134_v8  ;;  %1988 = vmatmul.mubr.bf16.vlgmr.msra.gmra.mrb[0].mxu1 %v2422_v1 }
  0x44   :  { %188 = vmatprep.mubr.bf16.mxu0 %v2422_v1  ;;  %1992 = vmatpush3.bf16.msra.mxu1 %v2137_v9 }
  0x45   :  { %1995 = vmatprep.mubr.msk.bf16.mxu1 %vm2423_vm0, %v2421_v0  ;;  %1993 = vmatprep.subr.bf16.mxu1 %v2421_v0 }
  0x48   :  { %1994 = vmatpush3.bf16.msra.mxu1 %v2138_v10 }
  0x49   :  { %1999 = vmatprep.subr.bf16.mxu1 %v2421_v0 }
  0x4b   :  { %1869 = vmatmul.mubr.msk.bf16.gmra.mrb[4].mxu0 %vm133_vm1, %v2135_v11  ;;  %1996 = vmatmul.mubr.bf16.vlgmr.msra.gmra.mrb[4].mxu1 %v2422_v1 }
  0x4c   :  { %198 = vmatprep.mubr.bf16.mxu0 %v2422_v1  ;;  %2003 = vmatprep.mubr.msk.bf16.mxu1 %vm2423_vm0, %v2421_v0 }
  0x53   :  { %1870 = vmatmul.mubr.msk.bf16.gmra.mrb[8].mxu0 %vm133_vm1, %v2136_v12 }
  0x54   :  { %208 = vmatprep.mubr.bf16.mxu0 %v2422_v1 }
  0x5b   :  { %1871 = vmatmul.mubr.msk.bf16.gmra.mrb[12].mxu0 %vm133_vm1, %v2139_v13 }
  0x5c   :  { %2019 = vmatprep.mubr.msk.bf16.mxu0 %vm2423_vm0, %v2421_v0 }
 0x116   :  { %v180_v21 = vpop.f32.mrb[0].mxu0  ;;  %v292_v24 = vpop.f32.mrb[0].mxu1 }
 0x117   :  { %v181_v22 = vadd.f32 %v180_v21, %v86_v19  ;;  %v182_v23 = vpop.f32.mrb[1].mxu0  ;;  %v1989_v27 = vpop.f32.mrb[1].mxu1 }
 0x118   :  { %v2545_v25 = vadd.f32 %v182_v23, %v90_v20  ;;  %v184_v26 = vpop.f32.mrb[2].mxu0  ;;  %v295_v31 = vpop.f32.mrb[2].mxu1  ;;  %v2141_v23 = vld [vmem:[%s3000_s2 + $0x8] sm:$0xff]  }
 0x119   :  { %v2547_v28 = vadd.f32 %v184_v26, %v86_v19  ;;  %v355_v29 = vadd.f32 %v292_v24, %v181_v22  ;;  %v186_v30 = vpop.f32.mrb[3].mxu0  ;;  %v1990_v33 = vpop.f32.mrb[3].mxu1  ;;  %v2140_v22 = vld [vmem:[%s3000_s2] sm:$0xff]  }
 0x11a   :  { %v2549_v32 = vadd.f32 %v186_v30, %v90_v20  ;;  %2000 = vmatpush3.bf16.msra.mxu1 %v2140_v22 }
 0x11b   :  { %2168 = vtanh.f32 %v355_v29  ;;  %v1877_v3 = vmul.f32 -1.442695, %v355_v29  ;;  %2001 = vmatprep.subr.bf16.mxu1 %v2421_v0 }
 0x11e   :  { %v190_v34 = vpop.f32.mrb[4].mxu0  ;;  %v348_v37 = vpop.f32.mrb[4].mxu1  ;;  %2002 = vmatpush3.bf16.msra.mxu1 %v2141_v23 }
 0x11f   :  { %v2551_v35 = vadd.f32 %v190_v34, %v86_v19  ;;  %v192_v36 = vpop.f32.mrb[5].mxu0  ;;  %v1997_v40 = vpop.f32.mrb[5].mxu1  ;;  %2007 = vmatprep.subr.bf16.mxu1 %v2421_v0  ;;  %v2142_v34 = vld [vmem:[#allocation9] sm:$0xff]  }
 0x120   :  { %v2553_v38 = vadd.f32 %v192_v36, %v90_v20  ;;  %v194_v39 = vpop.f32.mrb[6].mxu0  ;;  %v351_v43 = vpop.f32.mrb[6].mxu1 }
 0x121   :  { %v2555_v41 = vadd.f32 %v194_v39, %v86_v19  ;;  %v196_v42 = vpop.f32.mrb[7].mxu0  ;;  %v1998_v45 = vpop.f32.mrb[7].mxu1 }
 0x122   :  { %v2557_v44 = vadd.f32 %v196_v42, %v90_v20 }
 0x125   :  { %v2169_v46 = vpop.eup %2168 }
 0x126   :  { %v200_v47 = vpop.f32.mrb[8].mxu0  ;;  %365 = vrot.lane.b32.xlu0 %v2169_v46, %s2418_s1 }
 0x127   :  { %v2560_v48 = vadd.f32 %v200_v47, %v86_v19  ;;  %v202_v49 = vpop.f32.mrb[9].mxu0 }
 0x128   :  { %v2562_v50 = vadd.f32 %v202_v49, %v90_v20  ;;  %v204_v51 = vpop.f32.mrb[10].mxu0 }
 0x129   :  { %v2564_v52 = vadd.f32 %v204_v51, %v86_v19  ;;  %v206_v53 = vpop.f32.mrb[11].mxu0 }
 0x12a   :  { %v2566_v54 = vadd.f32 %v206_v53, %v90_v20 }
 0x12e   :  { %v210_v55 = vpop.f32.mrb[12].mxu0 }
 0x12f   :  { %v2568_v56 = vadd.f32 %v210_v55, %v86_v19  ;;  %v212_v57 = vpop.f32.mrb[13].mxu0 }
 0x130   :  { %v2570_v58 = vadd.f32 %v212_v57, %v90_v20  ;;  %v214_v59 = vpop.f32.mrb[14].mxu0 }
 0x131   :  { %v2572_v60 = vadd.f32 %v214_v59, %v86_v19  ;;  %v216_v61 = vpop.f32.mrb[15].mxu0 }
 0x132   :  { %v217_v62 = vadd.f32 %v216_v61, %v90_v20 }
 0x134   :  { %v382_v63 = vadd.f32 %v348_v37, %v217_v62  ;;  %v2143_v37 = vld [vmem:[#allocation9 + $0x8] sm:$0xff]  }
 0x136   :  { %2170 = vtanh.f32 %v382_v63  ;;  %v1878_v6 = vmul.f32 -1.442695, %v382_v63 }
 0x137   :  { %2172 = vpow2.f32 %v1877_v3 }
 0x140   :  { %v2171_v2 = vpop.eup %2170 }
 0x141   :  { %392 = vrot.lane.b32.xlu0 %v2171_v2, %s2418_s1  ;;  %v2173_v4 = vpop.eup %2172 }
 0x142   :  { %v359_v5 = vadd.f32 1.0, %v2173_v4 }
 0x144   :  { %2174 = vrcp.f32 %v359_v5 }
 0x145   :  { %2176 = vpow2.f32 %v1878_v6 }
 0x14e   :  { %v2175_v7 = vpop.eup %2174 }
 0x14f   :  { %v2177_v10 = vpop.eup %2176  ;;  %v363_v15 = vmul.f32 0.0, %v2175_v7 }
 0x150   :  { %v386_v11 = vadd.f32 1.0, %v2177_v10 }
 0x152   :  { %2178 = vrcp.f32 %v386_v11 }
 0x15c   :  { %v2179_v12 = vpop.eup %2178 }
 0x15d   :  { %v390_v19 = vmul.f32 0.0, %v2179_v12 }
 0x198   :  { %v366_v8 = vpop.permute.xlu0 %365 }
 0x199   :  { %v368_v9 = vmul.f32 %v2175_v7, %v366_v8 }
 0x19b   :  { %370 = vrot.lane.b32.xlu1 %v368_v9, %s2424_s4 }
 0x1b3   :  { %v393_v13 = vpop.permute.xlu0 %392 }
 0x1b4   :  { %v395_v14 = vmul.f32 %v2179_v12, %v393_v13 }
 0x1b6   :  { %397 = vrot.lane.b32.xlu1 %v395_v14, %s2424_s4 }
 0x20d   :  { %v371_v16 = vpop.permute.xlu1 %370 }
 0x20e   :  { %v2577_v17 = vadd.f32 %v371_v16, %v363_v15  ;;  %v2144_v16 = vld [vmem:[%s3000_s2] sm:$0xff]  }
 0x20f   :  { %2016 = vmatpush3.bf16.msra.mxu0 %v2144_v16 }
 0x210   :  { %2180 = vtanh.f32 %v2577_v17  ;;  %2017 = vmatprep.subr.bf16.mxu0 %v2421_v0 }
 0x21a   :  { %v2181_v18 = vpop.eup %2180 }
 0x21b   :  { %376 = vrot.lane.b32.xlu0 %v2181_v18, %s2418_s1 }
 0x228   :  { %v398_v20 = vpop.permute.xlu1 %397 }
 0x229   :  { %v2581_v21 = vadd.f32 %v398_v20, %v390_v19  ;;  %v2146_v19 = vld [vmem:[#allocation9] sm:$0xff]   ;;  %v2147_v20 = vld [vmem:[#allocation9 + $0x8] sm:$0xff]  }
 0x22b   :  { %2182 = vtanh.f32 %v2581_v21 }
 0x235   :  { %v2183_v24 = vpop.eup %2182 }
 0x236   :  { %403 = vrot.lane.b32.xlu1 %v2183_v24, %s2418_s1 }
 0x28d   :  { %v377_v26 = vpop.permute.xlu0 %376 }
 0x28e   :  { %v2593_v27 = vmul.f32 %v2175_v7, %v377_v26 }
 0x290   :  { %v433_v29 = vpack.c.bf16 %v2593_v27, %v2593_v27 }
 0x292   :  { %439 = vrot.lane.b32.xlu0 %v433_v29, %s2424_s4 }
 0x2a8   :  { %v404_v30 = vpop.permute.xlu1 %403 }
 0x2a9   :  { %v2598_v31 = vmul.f32 %v2179_v12, %v404_v30 }
 0x2ab   :  { %v496_v33 = vpack.c.bf16 %v2598_v31, %v2598_v31 }
 0x2ad   :  { %502 = vrot.lane.b32.xlu1 %v496_v33, %s2424_s4 }
 0x304   :  { %v440_v36 = vpop.permute.xlu0 %439 }
 0x305   :  { %2004 = vmatmul.mubr.msk.bf16.vlgmr.msra.gmra.mrb[8].mxu1 %vm133_vm1, %v440_v36 }
 0x306   :  { %2008 = vmatpush3.bf16.msra.mxu1 %v2142_v34  ;;  %2011 = vmatprep.mubr.msk.bf16.mxu1 %vm2423_vm0, %v2421_v0 }
 0x307   :  { %2009 = vmatprep.subr.bf16.mxu1 %v2421_v0 }
 0x30a   :  { %2010 = vmatpush3.bf16.msra.mxu1 %v2143_v37 }
 0x30b   :  { %2023 = vmatprep.subr.bf16.mxu1 %v2421_v0 }
 0x31f   :  { %v503_v39 = vpop.permute.xlu1 %502 }
 0x320   :  { %2012 = vmatmul.mubr.msk.bf16.vlgmr.msra.gmra.mrb[12].mxu1 %vm133_vm1, %v503_v39 }
 0x321   :  { %2027 = vmatprep.mubr.msk.bf16.mxu1 %vm2423_vm0, %v2421_v0  ;;  %2024 = vmatpush3.bf16.msra.mxu1 %v2146_v19 }
 0x322   :  { %2025 = vmatprep.subr.bf16.mxu1 %v2421_v0 }
 0x325   :  { %2026 = vmatpush3.bf16.msra.mxu1 %v2147_v20 }
 0x326   :  { %2039 = vmatprep.subr.bf16.mxu1 %v2421_v0 }
 0x3d8   :  { %v490_v40 = vpop.f32.mrb[8].mxu1 }
 0x3d9   :  { %v561_v42 = vadd.f32 %v490_v40, %v2547_v28  ;;  %v2005_v43 = vpop.f32.mrb[9].mxu1 }
 0x3da   :  { %v493_v45 = vpop.f32.mrb[10].mxu1 }
 0x3db   :  { %2184 = vtanh.f32 %v561_v42  ;;  %v2006_v46 = vpop.f32.mrb[11].mxu1  ;;  %v1885_v61 = vmul.f32 -1.442695, %v561_v42 }
 0x3e5   :  { %v2185_v47 = vpop.eup %2184 }
 0x3e6   :  { %571 = vrot.lane.b32.xlu0 %v2185_v47, %s2418_s1 }
 0x3f3   :  { %v553_v49 = vpop.f32.mrb[12].mxu1 }
 0x3f4   :  { %v588_v51 = vadd.f32 %v553_v49, %v2570_v58  ;;  %v2013_v53 = vpop.f32.mrb[13].mxu1 }
 0x3f5   :  { %v556_v55 = vpop.f32.mrb[14].mxu1 }
 0x3f6   :  { %2186 = vtanh.f32 %v588_v51  ;;  %v2014_v57 = vpop.f32.mrb[15].mxu1  ;;  %v1886_v63 = vmul.f32 -1.442695, %v588_v51 }
 0x3f7   :  { %2188 = vpow2.f32 %v1885_v61 }
 0x400   :  { %v2187_v59 = vpop.eup %2186 }
 0x401   :  { %598 = vrot.lane.b32.xlu1 %v2187_v59, %s2418_s1  ;;  %v2189_v28 = vpop.eup %2188 }
 0x402   :  { %v565_v62 = vadd.f32 1.0, %v2189_v28 }
 0x404   :  { %2190 = vrcp.f32 %v565_v62 }
 0x405   :  { %2192 = vpow2.f32 %v1886_v63 }
 0x40e   :  { %v2191_v2 = vpop.eup %2190 }
 0x40f   :  { %v2193_v58 = vpop.eup %2192  ;;  %v569_v9 = vmul.f32 %v2191_v2, %v2577_v17  ;;  %v2145_v17 = vld [vmem:[%s3000_s2 + $0x8] sm:$0xff]  }
 0x410   :  { %v592_v5 = vadd.f32 1.0, %v2193_v58  ;;  %2018 = vmatpush3.bf16.msra.mxu0 %v2145_v17 }
 0x411   :  { %2031 = vmatprep.subr.bf16.mxu0 %v2421_v0 }
 0x412   :  { %2194 = vrcp.f32 %v592_v5 }
 0x41c   :  { %v2195_v6 = vpop.eup %2194 }
 0x41d   :  { %v596_v13 = vmul.f32 %v2195_v6, %v2581_v21 }
 0x458   :  { %v572_v3 = vpop.permute.xlu0 %571 }
 0x459   :  { %v574_v4 = vmul.f32 %v2191_v2, %v572_v3 }
 0x45b   :  { %576 = vrot.lane.b32.xlu0 %v574_v4, %s2424_s4 }
 0x473   :  { %v599_v7 = vpop.permute.xlu1 %598 }
 0x474   :  { %v601_v8 = vmul.f32 %v2195_v6, %v599_v7 }
 0x476   :  { %603 = vrot.lane.b32.xlu1 %v601_v8, %s2424_s4 }
 0x4cd   :  { %v577_v10 = vpop.permute.xlu0 %576 }
 0x4ce   :  { %v2618_v11 = vadd.f32 %v577_v10, %v569_v9  ;;  %v2148_v10 = vld [vmem:[%s3000_s2] sm:$0xff]  }
 0x4d0   :  { %2196 = vtanh.f32 %v2618_v11 }
 0x4da   :  { %v2197_v12 = vpop.eup %2196 }
 0x4db   :  { %582 = vrot.lane.b32.xlu0 %v2197_v12, %s2418_s1 }
 0x4e8   :  { %v604_v14 = vpop.permute.xlu1 %603 }
 0x4e9   :  { %v2623_v15 = vadd.f32 %v604_v14, %v596_v13  ;;  %v2150_v13 = vld [vmem:[#allocation9] sm:$0xff]   ;;  %v2151_v14 = vld [vmem:[#allocation9 + $0x8] sm:$0xff]  }
 0x4eb   :  { %2198 = vtanh.f32 %v2623_v15 }
 0x4f5   :  { %v2199_v18 = vpop.eup %2198 }
 0x4f6   :  { %609 = vrot.lane.b32.xlu1 %v2199_v18, %s2418_s1 }
 0x54d   :  { %v583_v21 = vpop.permute.xlu0 %582 }
 0x54e   :  { %v2637_v22 = vmul.f32 %v2191_v2, %v583_v21 }
 0x550   :  { %v639_v23 = vpack.c.bf16 %v2637_v22, %v2637_v22 }
 0x552   :  { %645 = vrot.lane.b32.xlu0 %v639_v23, %s2424_s4 }
 0x568   :  { %v610_v24 = vpop.permute.xlu1 %609 }
 0x569   :  { %v2642_v26 = vmul.f32 %v2195_v6, %v610_v24 }
 0x56b   :  { %v702_v29 = vpack.c.bf16 %v2642_v26, %v2642_v26 }
 0x56d   :  { %708 = vrot.lane.b32.xlu1 %v702_v29, %s2424_s4 }
 0x5c4   :  { %v646_v30 = vpop.permute.xlu0 %645 }
 0x5c5   :  { %2020 = vmatmul.mubr.msk.bf16.vlgmr.msra.gmra.mrb[16].mxu0 %vm133_vm1, %v646_v30 }
 0x5c6   :  { %2035 = vmatprep.mubr.msk.bf16.mxu0 %vm2423_vm0, %v2421_v0  ;;  %2032 = vmatpush3.bf16.msra.mxu0 %v2148_v10 }
 0x5c7   :  { %2033 = vmatprep.subr.bf16.mxu0 %v2421_v0 }
 0x5df   :  { %v709_v33 = vpop.permute.xlu1 %708 }
 0x5e0   :  { %2028 = vmatmul.mubr.msk.bf16.vlgmr.msra.gmra.mrb[16].mxu1 %vm133_vm1, %v709_v33 }
 0x5e1   :  { %2043 = vmatprep.mubr.msk.bf16.mxu1 %vm2423_vm0, %v2421_v0  ;;  %2040 = vmatpush3.bf16.msra.mxu1 %v2150_v13 }
 0x5e2   :  { %2041 = vmatprep.subr.bf16.mxu1 %v2421_v0 }
 0x5e5   :  { %2042 = vmatpush3.bf16.msra.mxu1 %v2151_v14 }
 0x5e6   :  { %2055 = vmatprep.subr.bf16.mxu1 %v2421_v0 }
 0x698   :  { %v696_v34 = vpop.f32.mrb[16].mxu0 }
 0x699   :  { %v767_v36 = vadd.f32 %v696_v34, %v2551_v35  ;;  %v2021_v37 = vpop.f32.mrb[17].mxu0 }
 0x69a   :  { %v699_v39 = vpop.f32.mrb[18].mxu0 }
 0x69b   :  { %2200 = vtanh.f32 %v767_v36  ;;  %v2022_v40 = vpop.f32.mrb[19].mxu0  ;;  %v1893_v53 = vmul.f32 -1.442695, %v767_v36 }
 0x6a5   :  { %v2201_v42 = vpop.eup %2200 }
 0x6a6   :  { %777 = vrot.lane.b32.xlu0 %v2201_v42, %s2418_s1 }
 0x6b3   :  { %v759_v43 = vpop.f32.mrb[16].mxu1 }
 0x6b4   :  { %v794_v45 = vadd.f32 %v759_v43, %v2566_v54  ;;  %v2029_v46 = vpop.f32.mrb[17].mxu1 }
 0x6b5   :  { %v762_v47 = vpop.f32.mrb[18].mxu1 }
 0x6b6   :  { %2202 = vtanh.f32 %v794_v45  ;;  %v2030_v49 = vpop.f32.mrb[19].mxu1  ;;  %v1894_v57 = vmul.f32 -1.442695, %v794_v45 }
 0x6b7   :  { %2204 = vpow2.f32 %v1893_v53 }
 0x6c0   :  { %v2203_v51 = vpop.eup %2202 }
 0x6c1   :  { %804 = vrot.lane.b32.xlu1 %v2203_v51, %s2418_s1  ;;  %v2205_v35 = vpop.eup %2204 }
 0x6c2   :  { %v771_v55 = vadd.f32 1.0, %v2205_v35 }
 0x6c4   :  { %2206 = vrcp.f32 %v771_v55 }
 0x6c5   :  { %2208 = vpow2.f32 %v1894_v57 }
 0x6ce   :  { %v2207_v59 = vpop.eup %2206 }
 0x6cf   :  { %v2209_v54 = vpop.eup %2208  ;;  %v775_v4 = vmul.f32 %v2207_v59, %v2618_v11  ;;  %v2149_v11 = vld [vmem:[%s3000_s2 + $0x8] sm:$0xff]  }
 0x6d0   :  { %v798_v62 = vadd.f32 1.0, %v2209_v54  ;;  %2034 = vmatpush3.bf16.msra.mxu0 %v2149_v11 }
 0x6d1   :  { %2047 = vmatprep.subr.bf16.mxu0 %v2421_v0 }
 0x6d2   :  { %2210 = vrcp.f32 %v798_v62 }
 0x6dc   :  { %v2211_v63 = vpop.eup %2210 }
 0x6dd   :  { %v802_v7 = vmul.f32 %v2211_v63, %v2623_v15 }
 0x718   :  { %v778_v61 = vpop.permute.xlu0 %777 }
 0x719   :  { %v780_v28 = vmul.f32 %v2207_v59, %v778_v61 }
 0x71b   :  { %782 = vrot.lane.b32.xlu0 %v780_v28, %s2424_s4 }
 0x733   :  { %v805_v2 = vpop.permute.xlu1 %804 }
 0x734   :  { %v807_v3 = vmul.f32 %v2211_v63, %v805_v2 }
 0x736   :  { %809 = vrot.lane.b32.xlu1 %v807_v3, %s2424_s4 }
 0x78d   :  { %v783_v58 = vpop.permute.xlu0 %782 }
 0x78e   :  { %v2660_v5 = vadd.f32 %v783_v58, %v775_v4  ;;  %v2152_v58 = vld [vmem:[%s3000_s2] sm:$0xff]  }
 0x790   :  { %2212 = vtanh.f32 %v2660_v5 }
 0x79a   :  { %v2213_v6 = vpop.eup %2212 }
 0x79b   :  { %788 = vrot.lane.b32.xlu0 %v2213_v6, %s2418_s1 }
 0x7a8   :  { %v810_v8 = vpop.permute.xlu1 %809 }
 0x7a9   :  { %v2665_v9 = vadd.f32 %v810_v8, %v802_v7  ;;  %v2154_v7 = vld [vmem:[#allocation9] sm:$0xff]   ;;  %v2155_v8 = vld [vmem:[#allocation9 + $0x8] sm:$0xff]  }
 0x7ab   :  { %2214 = vtanh.f32 %v2665_v9 }
 0x7b5   :  { %v2215_v12 = vpop.eup %2214 }
 0x7b6   :  { %815 = vrot.lane.b32.xlu1 %v2215_v12, %s2418_s1 }
 0x80d   :  { %v789_v15 = vpop.permute.xlu0 %788 }
 0x80e   :  { %v2679_v16 = vmul.f32 %v2207_v59, %v789_v15 }
 0x810   :  { %v845_v17 = vpack.c.bf16 %v2679_v16, %v2679_v16 }
 0x812   :  { %851 = vrot.lane.b32.xlu0 %v845_v17, %s2424_s4 }
 0x828   :  { %v816_v18 = vpop.permute.xlu1 %815 }
 0x829   :  { %v2684_v19 = vmul.f32 %v2211_v63, %v816_v18 }
 0x82b   :  { %v908_v20 = vpack.c.bf16 %v2684_v19, %v2684_v19 }
 0x82d   :  { %914 = vrot.lane.b32.xlu1 %v908_v20, %s2424_s4 }
 0x884   :  { %v852_v21 = vpop.permute.xlu0 %851 }
 0x885   :  { %2036 = vmatmul.mubr.msk.bf16.vlgmr.msra.gmra.mrb[20].mxu0 %vm133_vm1, %v852_v21 }
 0x886   :  { %2051 = vmatprep.mubr.msk.bf16.mxu0 %vm2423_vm0, %v2421_v0  ;;  %2048 = vmatpush3.bf16.msra.mxu0 %v2152_v58 }
 0x887   :  { %2049 = vmatprep.subr.bf16.mxu0 %v2421_v0 }
 0x89f   :  { %v915_v23 = vpop.permute.xlu1 %914 }
 0x8a0   :  { %2044 = vmatmul.mubr.msk.bf16.vlgmr.msra.gmra.mrb[20].mxu1 %vm133_vm1, %v915_v23 }
 0x8a1   :  { %2059 = vmatprep.mubr.msk.bf16.mxu1 %vm2423_vm0, %v2421_v0  ;;  %2056 = vmatpush3.bf16.msra.mxu1 %v2154_v7 }
 0x8a2   :  { %2057 = vmatprep.subr.bf16.mxu1 %v2421_v0 }
 0x8a5   :  { %2058 = vmatpush3.bf16.msra.mxu1 %v2155_v8 }
 0x8a6   :  { %2071 = vmatprep.subr.bf16.mxu1 %v2421_v0 }
 0x958   :  { %v902_v24 = vpop.f32.mrb[20].mxu0 }
 0x959   :  { %v973_v29 = vadd.f32 %v902_v24, %v2555_v41  ;;  %v2037_v30 = vpop.f32.mrb[21].mxu0 }
 0x95a   :  { %v905_v33 = vpop.f32.mrb[22].mxu0 }
 0x95b   :  { %2216 = vtanh.f32 %v973_v29  ;;  %v2038_v34 = vpop.f32.mrb[23].mxu0  ;;  %v1901_v46 = vmul.f32 -1.442695, %v973_v29 }
 0x965   :  { %v2217_v36 = vpop.eup %2216 }
 0x966   :  { %983 = vrot.lane.b32.xlu0 %v2217_v36, %s2418_s1 }
 0x973   :  { %v965_v37 = vpop.f32.mrb[20].mxu1 }
 0x974   :  { %v1000_v39 = vadd.f32 %v965_v37, %v2562_v50  ;;  %v2045_v40 = vpop.f32.mrb[21].mxu1 }
 0x975   :  { %v968_v42 = vpop.f32.mrb[22].mxu1 }
 0x976   :  { %2218 = vtanh.f32 %v1000_v39  ;;  %v2046_v43 = vpop.f32.mrb[23].mxu1  ;;  %v1902_v49 = vmul.f32 -1.442695, %v1000_v39 }
 0x977   :  { %2220 = vpow2.f32 %v1901_v46 }
 0x980   :  { %v2219_v45 = vpop.eup %2218 }
 0x981   :  { %1010 = vrot.lane.b32.xlu1 %v2219_v45, %s2418_s1  ;;  %v2221_v41 = vpop.eup %2220 }
 0x982   :  { %v977_v47 = vadd.f32 1.0, %v2221_v41 }
 0x984   :  { %2222 = vrcp.f32 %v977_v47 }
 0x985   :  { %2224 = vpow2.f32 %v1902_v49 }
 0x98e   :  { %v2223_v51 = vpop.eup %2222 }
 0x98f   :  { %v2225_v50 = vpop.eup %2224  ;;  %v981_v28 = vmul.f32 %v2223_v51, %v2660_v5  ;;  %v2153_v5 = vld [vmem:[%s3000_s2 + $0x8] sm:$0xff]  }
 0x990   :  { %v1004_v55 = vadd.f32 1.0, %v2225_v50  ;;  %2050 = vmatpush3.bf16.msra.mxu0 %v2153_v5 }
 0x991   :  { %2063 = vmatprep.subr.bf16.mxu0 %v2421_v0 }
 0x992   :  { %2226 = vrcp.f32 %v1004_v55 }
 0x99c   :  { %v2227_v57 = vpop.eup %2226 }
 0x99d   :  { %v1008_v2 = vmul.f32 %v2227_v57, %v2665_v9 }
 0x9d8   :  { %v984_v53 = vpop.permute.xlu0 %983 }
 0x9d9   :  { %v986_v35 = vmul.f32 %v2223_v51, %v984_v53 }
 0x9db   :  { %988 = vrot.lane.b32.xlu0 %v986_v35, %s2424_s4 }
 0x9f3   :  { %v1011_v59 = vpop.permute.xlu1 %1010 }
 0x9f4   :  { %v1013_v61 = vmul.f32 %v2227_v57, %v1011_v59 }
 0x9f6   :  { %1015 = vrot.lane.b32.xlu1 %v1013_v61, %s2424_s4 }
 0xa4d   :  { %v989_v54 = vpop.permute.xlu0 %988 }
 0xa4e   :  { %v2702_v62 = vadd.f32 %v989_v54, %v981_v28  ;;  %v2156_v54 = vld [vmem:[%s3000_s2] sm:$0xff]  }
 0xa50   :  { %2228 = vtanh.f32 %v2702_v62 }
 0xa5a   :  { %v2229_v63 = vpop.eup %2228 }
 0xa5b   :  { %994 = vrot.lane.b32.xlu0 %v2229_v63, %s2418_s1 }
 0xa68   :  { %v1016_v3 = vpop.permute.xlu1 %1015 }
 0xa69   :  { %v2707_v4 = vadd.f32 %v1016_v3, %v1008_v2  ;;  %v2158_v2 = vld [vmem:[#allocation9] sm:$0xff]   ;;  %v2159_v3 = vld [vmem:[#allocation9 + $0x8] sm:$0xff]  }
 0xa6b   :  { %2230 = vtanh.f32 %v2707_v4 }
 0xa75   :  { %v2231_v6 = vpop.eup %2230 }
 0xa76   :  { %1021 = vrot.lane.b32.xlu1 %v2231_v6, %s2418_s1 }
 0xacd   :  { %v995_v9 = vpop.permute.xlu0 %994 }
 0xace   :  { %v2721_v10 = vmul.f32 %v2223_v51, %v995_v9 }
 0xad0   :  { %v1051_v11 = vpack.c.bf16 %v2721_v10, %v2721_v10 }
 0xad2   :  { %1057 = vrot.lane.b32.xlu0 %v1051_v11, %s2424_s4 }
 0xae8   :  { %v1022_v12 = vpop.permute.xlu1 %1021 }
 0xae9   :  { %v2726_v13 = vmul.f32 %v2227_v57, %v1022_v12 }
 0xaeb   :  { %v1114_v14 = vpack.c.bf16 %v2726_v13, %v2726_v13 }
 0xaed   :  { %1120 = vrot.lane.b32.xlu1 %v1114_v14, %s2424_s4 }
 0xb44   :  { %v1058_v15 = vpop.permute.xlu0 %1057 }
 0xb45   :  { %2052 = vmatmul.mubr.msk.bf16.vlgmr.msra.gmra.mrb[24].mxu0 %vm133_vm1, %v1058_v15 }
 0xb46   :  { %2067 = vmatprep.mubr.msk.bf16.mxu0 %vm2423_vm0, %v2421_v0  ;;  %2064 = vmatpush3.bf16.msra.mxu0 %v2156_v54 }
 0xb47   :  { %2065 = vmatprep.subr.bf16.mxu0 %v2421_v0 }
 0xb5f   :  { %v1121_v17 = vpop.permute.xlu1 %1120 }
 0xb60   :  { %2060 = vmatmul.mubr.msk.bf16.vlgmr.msra.gmra.mrb[24].mxu1 %vm133_vm1, %v1121_v17 }
 0xb61   :  { %2075 = vmatprep.mubr.msk.bf16.mxu1 %vm2423_vm0, %v2421_v0  ;;  %2072 = vmatpush3.bf16.msra.mxu1 %v2158_v2 }
 0xb62   :  { %2073 = vmatprep.subr.bf16.mxu1 %v2421_v0 }
 0xb65   :  { %2074 = vmatpush3.bf16.msra.mxu1 %v2159_v3 }
 0xb66   :  { %2087 = vmatprep.subr.bf16.mxu1 %v2421_v0 }
 0xc18   :  { %v1108_v18 = vpop.f32.mrb[24].mxu0 }
 0xc19   :  { %v1179_v20 = vadd.f32 %v1108_v18, %v2560_v48  ;;  %v2053_v21 = vpop.f32.mrb[25].mxu0 }
 0xc1a   :  { %v1111_v23 = vpop.f32.mrb[26].mxu0 }
 0xc1b   :  { %2232 = vtanh.f32 %v1179_v20  ;;  %v2054_v24 = vpop.f32.mrb[27].mxu0  ;;  %v1909_v40 = vmul.f32 -1.442695, %v1179_v20 }
 0xc25   :  { %v2233_v29 = vpop.eup %2232 }
 0xc26   :  { %1189 = vrot.lane.b32.xlu0 %v2233_v29, %s2418_s1 }
 0xc33   :  { %v1171_v30 = vpop.f32.mrb[24].mxu1 }
 0xc34   :  { %v1206_v33 = vadd.f32 %v1171_v30, %v2557_v44  ;;  %v2061_v34 = vpop.f32.mrb[25].mxu1 }
 0xc35   :  { %v1174_v36 = vpop.f32.mrb[26].mxu1 }
 0xc36   :  { %2234 = vtanh.f32 %v1206_v33  ;;  %v2062_v37 = vpop.f32.mrb[27].mxu1  ;;  %v1910_v43 = vmul.f32 -1.442695, %v1206_v33 }
 0xc37   :  { %2236 = vpow2.f32 %v1909_v40 }
 0xc40   :  { %v2235_v39 = vpop.eup %2234 }
 0xc41   :  { %1216 = vrot.lane.b32.xlu1 %v2235_v39, %s2418_s1  ;;  %v2237_v48 = vpop.eup %2236 }
 0xc42   :  { %v1183_v42 = vadd.f32 1.0, %v2237_v48 }
 0xc44   :  { %2238 = vrcp.f32 %v1183_v42 }
 0xc45   :  { %2240 = vpow2.f32 %v1910_v43 }
 0xc4e   :  { %v2239_v45 = vpop.eup %2238 }
 0xc4f   :  { %v2241_v44 = vpop.eup %2240  ;;  %v1187_v35 = vmul.f32 %v2239_v45, %v2702_v62  ;;  %v2157_v62 = vld [vmem:[%s3000_s2 + $0x8] sm:$0xff]  }
 0xc50   :  { %v1210_v47 = vadd.f32 1.0, %v2241_v44  ;;  %2066 = vmatpush3.bf16.msra.mxu0 %v2157_v62 }
 0xc51   :  { %2079 = vmatprep.subr.bf16.mxu0 %v2421_v0 }
 0xc52   :  { %2242 = vrcp.f32 %v1210_v47 }
 0xc5c   :  { %v2243_v49 = vpop.eup %2242 }
 0xc5d   :  { %v1214_v59 = vmul.f32 %v2243_v49, %v2707_v4 }
 0xc98   :  { %v1190_v46 = vpop.permute.xlu0 %1189 }
 0xc99   :  { %v1192_v41 = vmul.f32 %v2239_v45, %v1190_v46 }
 0xc9b   :  { %1194 = vrot.lane.b32.xlu0 %v1192_v41, %s2424_s4 }
 0xcb3   :  { %v1217_v51 = vpop.permute.xlu1 %1216 }
 0xcb4   :  { %v1219_v53 = vmul.f32 %v2243_v49, %v1217_v51 }
 0xcb6   :  { %1221 = vrot.lane.b32.xlu1 %v1219_v53, %s2424_s4 }
 0xd0d   :  { %v1195_v50 = vpop.permute.xlu0 %1194 }
 0xd0e   :  { %v2744_v55 = vadd.f32 %v1195_v50, %v1187_v35  ;;  %v2160_v50 = vld [vmem:[%s3000_s2] sm:$0xff]  }
 0xd10   :  { %2244 = vtanh.f32 %v2744_v55 }
 0xd1a   :  { %v2245_v57 = vpop.eup %2244 }
 0xd1b   :  { %1200 = vrot.lane.b32.xlu0 %v2245_v57, %s2418_s1 }
 0xd28   :  { %v1222_v61 = vpop.permute.xlu1 %1221 }
 0xd29   :  { %v2749_v28 = vadd.f32 %v1222_v61, %v1214_v59  ;;  %v2162_v59 = vld [vmem:[#allocation9] sm:$0xff]   ;;  %v2163_v61 = vld [vmem:[#allocation9 + $0x8] sm:$0xff]  }
 0xd2b   :  { %2246 = vtanh.f32 %v2749_v28 }
 0xd35   :  { %v2247_v63 = vpop.eup %2246 }
 0xd36   :  { %1227 = vrot.lane.b32.xlu1 %v2247_v63, %s2418_s1 }
 0xd8d   :  { %v1201_v4 = vpop.permute.xlu0 %1200 }
 0xd8e   :  { %v2763_v58 = vmul.f32 %v2239_v45, %v1201_v4 }
 0xd90   :  { %v1243_v5 = vpack.c.bf16 %v2763_v58, %v2763_v58 }
 0xd92   :  { %1249 = vrot.lane.b32.xlu0 %v1243_v5, %s2424_s4 }
 0xda8   :  { %v1228_v6 = vpop.permute.xlu1 %1227 }
 0xda9   :  { %v2768_v7 = vmul.f32 %v2243_v49, %v1228_v6 }
 0xdab   :  { %v1306_v8 = vpack.c.bf16 %v2768_v7, %v2768_v7 }
 0xdad   :  { %1312 = vrot.lane.b32.xlu1 %v1306_v8, %s2424_s4 }
 0xe04   :  { %v1250_v9 = vpop.permute.xlu0 %1249 }
 0xe05   :  { %2068 = vmatmul.mubr.msk.bf16.vlgmr.msra.gmra.mrb[28].mxu0 %vm133_vm1, %v1250_v9 }
 0xe06   :  { %2083 = vmatprep.mubr.msk.bf16.mxu0 %vm2423_vm0, %v2421_v0  ;;  %2080 = vmatpush3.bf16.msra.mxu0 %v2160_v50 }
 0xe07   :  { %2081 = vmatprep.subr.bf16.mxu0 %v2421_v0 }
 0xe1f   :  { %v1313_v11 = vpop.permute.xlu1 %1312 }
 0xe20   :  { %2076 = vmatmul.mubr.msk.bf16.vlgmr.msra.gmra.mrb[28].mxu1 %vm133_vm1, %v1313_v11 }
 0xe21   :  { %2091 = vmatprep.mubr.msk.bf16.mxu1 %vm2423_vm0, %v2421_v0  ;;  %2088 = vmatpush3.bf16.msra.mxu1 %v2162_v59 }
 0xe22   :  { %2089 = vmatprep.subr.bf16.mxu1 %v2421_v0 }
 0xe25   :  { %2090 = vmatpush3.bf16.msra.mxu1 %v2163_v61 }
 0xe26   :  { %2103 = vmatprep.subr.bf16.mxu1 %v2421_v0 }
 0xed8   :  { %v1300_v12 = vpop.f32.mrb[28].mxu0 }
 0xed9   :  { %v1371_v14 = vadd.f32 %v1300_v12, %v2564_v52  ;;  %v2069_v15 = vpop.f32.mrb[29].mxu0 }
 0xeda   :  { %v1303_v17 = vpop.f32.mrb[30].mxu0 }
 0xedb   :  { %2248 = vtanh.f32 %v1371_v14  ;;  %v2070_v18 = vpop.f32.mrb[31].mxu0  ;;  %v1917_v34 = vmul.f32 -1.442695, %v1371_v14 }
 0xee5   :  { %v2249_v20 = vpop.eup %2248 }
 0xee6   :  { %1381 = vrot.lane.b32.xlu0 %v2249_v20, %s2418_s1 }
 0xef3   :  { %v1363_v21 = vpop.f32.mrb[28].mxu1 }
 0xef4   :  { %v1398_v23 = vadd.f32 %v1363_v21, %v2553_v38  ;;  %v2077_v24 = vpop.f32.mrb[29].mxu1 }
 0xef5   :  { %v1366_v29 = vpop.f32.mrb[30].mxu1 }
 0xef6   :  { %2250 = vtanh.f32 %v1398_v23  ;;  %v2078_v30 = vpop.f32.mrb[31].mxu1  ;;  %v1918_v37 = vmul.f32 -1.442695, %v1398_v23 }
 0xef7   :  { %2252 = vpow2.f32 %v1917_v34 }
 0xf00   :  { %v2251_v33 = vpop.eup %2250 }
 0xf01   :  { %1408 = vrot.lane.b32.xlu1 %v2251_v33, %s2418_s1  ;;  %v2253_v52 = vpop.eup %2252 }
 0xf02   :  { %v1375_v36 = vadd.f32 1.0, %v2253_v52 }
 0xf04   :  { %2254 = vrcp.f32 %v1375_v36 }
 0xf05   :  { %2256 = vpow2.f32 %v1918_v37 }
 0xf0e   :  { %v2255_v39 = vpop.eup %2254 }
 0xf0f   :  { %v2257_v38 = vpop.eup %2256  ;;  %v1379_v41 = vmul.f32 %v2255_v39, %v2744_v55  ;;  %v2161_v55 = vld [vmem:[%s3000_s2 + $0x8] sm:$0xff]  }
 0xf10   :  { %v1402_v42 = vadd.f32 1.0, %v2257_v38  ;;  %2082 = vmatpush3.bf16.msra.mxu0 %v2161_v55 }
 0xf11   :  { %2095 = vmatprep.subr.bf16.mxu0 %v2421_v0 }
 0xf12   :  { %2258 = vrcp.f32 %v1402_v42 }
 0xf1c   :  { %v2259_v43 = vpop.eup %2258 }
 0xf1d   :  { %v1406_v51 = vmul.f32 %v2259_v43, %v2749_v28 }
 0xf58   :  { %v1382_v40 = vpop.permute.xlu0 %1381 }
 0xf59   :  { %v1384_v48 = vmul.f32 %v2255_v39, %v1382_v40 }
 0xf5b   :  { %1386 = vrot.lane.b32.xlu0 %v1384_v48, %s2424_s4 }
 0xf73   :  { %v1409_v45 = vpop.permute.xlu1 %1408 }
 0xf74   :  { %v1411_v46 = vmul.f32 %v2259_v43, %v1409_v45 }
 0xf76   :  { %1413 = vrot.lane.b32.xlu1 %v1411_v46, %s2424_s4 }
 0xfcd   :  { %v1387_v44 = vpop.permute.xlu0 %1386 }
 0xfce   :  { %v2786_v47 = vadd.f32 %v1387_v44, %v1379_v41  ;;  %v2164_v44 = vld [vmem:[%s3000_s2] sm:$0xff]  }
 0xfd0   :  { %2260 = vtanh.f32 %v2786_v47 }
 0xfda   :  { %v2261_v49 = vpop.eup %2260 }
 0xfdb   :  { %1392 = vrot.lane.b32.xlu0 %v2261_v49, %s2418_s1 }
 0xfe8   :  { %v1414_v53 = vpop.permute.xlu1 %1413 }
 0xfe9   :  { %v2791_v35 = vadd.f32 %v1414_v53, %v1406_v51  ;;  %v2166_v51 = vld [vmem:[#allocation9] sm:$0xff]   ;;  %v2167_v53 = vld [vmem:[#allocation9 + $0x8] sm:$0xff]  }
 0xfeb   :  { %2262 = vtanh.f32 %v2791_v35 }
 0xff5   :  { %v2263_v57 = vpop.eup %2262 }
 0xff6   :  { %1419 = vrot.lane.b32.xlu1 %v2263_v57, %s2418_s1 }
0x104d   :  { %v1393_v28 = vpop.permute.xlu0 %1392 }
0x104e   :  { %v2805_v54 = vmul.f32 %v2255_v39, %v1393_v28 }
0x1050   :  { %v1435_v62 = vpack.c.bf16 %v2805_v54, %v2805_v54 }
0x1052   :  { %1441 = vrot.lane.b32.xlu0 %v1435_v62, %s2424_s4 }
0x1068   :  { %v1420_v63 = vpop.permute.xlu1 %1419 }
0x1069   :  { %v2810_v2 = vmul.f32 %v2259_v43, %v1420_v63 }
0x106b   :  { %v1498_v3 = vpack.c.bf16 %v2810_v2, %v2810_v2 }
0x106d   :  { %1504 = vrot.lane.b32.xlu1 %v1498_v3, %s2424_s4 }
0x10c4   :  { %v1442_v4 = vpop.permute.xlu0 %1441 }
0x10c5   :  { %2084 = vmatmul.mubr.msk.bf16.vlgmr.msra.gmra.mrb[32].mxu0 %vm133_vm1, %v1442_v4 }
0x10c6   :  { %2099 = vmatprep.mubr.msk.bf16.mxu0 %vm2423_vm0, %v2421_v0  ;;  %2096 = vmatpush3.bf16.msra.mxu0 %v2164_v44 }
0x10c7   :  { %2097 = vmatprep.subr.bf16.mxu0 %v2421_v0 }
0x10df   :  { %v1505_v5 = vpop.permute.xlu1 %1504 }
0x10e0   :  { %2092 = vmatmul.mubr.msk.bf16.vlgmr.msra.gmra.mrb[32].mxu1 %vm133_vm1, %v1505_v5 }
0x10e1   :  { %2107 = vmatprep.mubr.msk.bf16.mxu1 %vm2423_vm0, %v2421_v0  ;;  %2104 = vmatpush3.bf16.msra.mxu1 %v2166_v51 }
0x10e2   :  { %2105 = vmatprep.subr.bf16.mxu1 %v2421_v0 }
0x10e5   :  { %2106 = vmatpush3.bf16.msra.mxu1 %v2167_v53 }
0x1198   :  { %v1492_v6 = vpop.f32.mrb[32].mxu0 }
0x1199   :  { %v1563_v8 = vadd.f32 %v1492_v6, %v2568_v56  ;;  %v2085_v9 = vpop.f32.mrb[33].mxu0 }
0x119a   :  { %v1495_v11 = vpop.f32.mrb[34].mxu0 }
0x119b   :  { %2264 = vtanh.f32 %v1563_v8  ;;  %v2086_v12 = vpop.f32.mrb[35].mxu0  ;;  %v1925_v24 = vmul.f32 -1.442695, %v1563_v8 }
0x11a5   :  { %v2265_v14 = vpop.eup %2264 }
0x11a6   :  { %1573 = vrot.lane.b32.xlu0 %v2265_v14, %s2418_s1 }
0x11b3   :  { %v1555_v15 = vpop.f32.mrb[32].mxu1 }
0x11b4   :  { %v1590_v17 = vadd.f32 %v1555_v15, %v2549_v32  ;;  %v2093_v18 = vpop.f32.mrb[33].mxu1 }
0x11b5   :  { %v1558_v20 = vpop.f32.mrb[34].mxu1 }
0x11b6   :  { %2266 = vtanh.f32 %v1590_v17  ;;  %v2094_v21 = vpop.f32.mrb[35].mxu1  ;;  %v1926_v30 = vmul.f32 -1.442695, %v1590_v17  ;;  %v235_v20 = vld [vmem:[%s3003_s5] sm:$0xff]  ;;  %s2425_s5 = smov [#allocation10]  }
0x11b7   :  { %2268 = vpow2.f32 %v1925_v24  ;;  %v1872_v21 = vadd.s32 4294967295, %v235_v20  ;;  %vm236_vm2 = vcmp.gt.s32.totalorder %v235_v20, 0 }
0x11c0   :  { %v2267_v23 = vpop.eup %2266 }
0x11c1   :  { %1600 = vrot.lane.b32.xlu1 %v2267_v23, %s2418_s1  ;;  %v2269_v56 = vpop.eup %2268 }
0x11c2   :  { %v1567_v29 = vadd.f32 1.0, %v2269_v56 }
0x11c4   :  { %2270 = vrcp.f32 %v1567_v29 }
0x11c5   :  { %2272 = vpow2.f32 %v1926_v30 }
0x11ce   :  { %v2271_v33 = vpop.eup %2270 }
0x11cf   :  { %v2273_v32 = vpop.eup %2272  ;;  %v1571_v48 = vmul.f32 %v2271_v33, %v2786_v47  ;;  %v2165_v47 = vld [vmem:[%s3000_s2 + $0x8] sm:$0xff]  }
0x11d0   :  { %v1594_v36 = vadd.f32 1.0, %v2273_v32  ;;  %2098 = vmatpush3.bf16.msra.mxu0 %v2165_v47 }
0x11d2   :  { %2274 = vrcp.f32 %v1594_v36 }
0x11dc   :  { %v2275_v37 = vpop.eup %2274 }
0x11dd   :  { %v1598_v45 = vmul.f32 %v2275_v37, %v2791_v35 }
0x1218   :  { %v1574_v34 = vpop.permute.xlu0 %1573 }
0x1219   :  { %v1576_v52 = vmul.f32 %v2271_v33, %v1574_v34 }
0x121b   :  { %1578 = vrot.lane.b32.xlu0 %v1576_v52, %s2424_s4 }
0x1233   :  { %v1601_v39 = vpop.permute.xlu1 %1600 }
0x1234   :  { %v1603_v40 = vmul.f32 %v2275_v37, %v1601_v39 }
0x1236   :  { %1605 = vrot.lane.b32.xlu1 %v1603_v40, %s2424_s4 }
0x128d   :  { %v1579_v38 = vpop.permute.xlu0 %1578 }
0x128e   :  { %v2828_v42 = vadd.f32 %v1579_v38, %v1571_v48 }
0x1290   :  { %2276 = vtanh.f32 %v2828_v42 }
0x129a   :  { %v2277_v43 = vpop.eup %2276 }
0x129b   :  { %1584 = vrot.lane.b32.xlu0 %v2277_v43, %s2418_s1 }
0x12a8   :  { %v1606_v46 = vpop.permute.xlu1 %1605 }
0x12a9   :  { %v2833_v41 = vadd.f32 %v1606_v46, %v1598_v45 }
0x12ab   :  { %2278 = vtanh.f32 %v2833_v41 }
0x12b5   :  { %v2279_v49 = vpop.eup %2278 }
0x12b6   :  { %1611 = vrot.lane.b32.xlu1 %v2279_v49, %s2418_s1 }
0x130d   :  { %v1585_v35 = vpop.permute.xlu0 %1584 }
0x130e   :  { %v2845_v50 = vmul.f32 %v2271_v33, %v1585_v35 }
0x1310   :  { %v1627_v55 = vpack.c.bf16 %v2845_v50, %v2845_v50 }
0x1312   :  { %1633 = vrot.lane.b32.xlu0 %v1627_v55, %s2424_s4 }
0x1328   :  { %v1612_v57 = vpop.permute.xlu1 %1611 }
0x1329   :  { %v2850_v59 = vmul.f32 %v2275_v37, %v1612_v57 }
0x132b   :  { %v1690_v61 = vpack.c.bf16 %v2850_v59, %v2850_v59 }
0x132d   :  { %1696 = vrot.lane.b32.xlu1 %v1690_v61, %s2424_s4 }
0x1384   :  { %v1634_v28 = vpop.permute.xlu0 %1633 }
0x1385   :  { %2100 = vmatmul.mubr.msk.bf16.vlgmr.msra.gmra.mrb[36].mxu0 %vm133_vm1, %v1634_v28 }
0x139f   :  { %v1697_v0 = vpop.permute.xlu1 %1696 }
0x13a0   :  { %2108 = vmatmul.mubr.msk.bf16.vlgmr.msra.gmra.mrb[36].mxu1 %vm133_vm1, %v1697_v0 }
0x1458   :  { %v1684_v62 = vpop.f32.mrb[36].mxu0 }
0x1459   :  { %v1755_v63 = vadd.f32 %v1684_v62, %v2572_v60  ;;  %v2101_v3 = vpop.f32.mrb[37].mxu0 }
0x145a   :  { %v1687_v4 = vpop.f32.mrb[38].mxu0 }
0x145b   :  { %2280 = vtanh.f32 %v1755_v63  ;;  %v2102_v5 = vpop.f32.mrb[39].mxu0  ;;  %v1933_v17 = vmul.f32 -1.442695, %v1755_v63 }
0x1465   :  { %v2281_v6 = vpop.eup %2280 }
0x1466   :  { %1765 = vrot.lane.b32.xlu0 %v2281_v6, %s2418_s1 }
0x1473   :  { %v1747_v8 = vpop.f32.mrb[36].mxu1 }
0x1474   :  { %v1781_v9 = vadd.f32 %v1747_v8, %v2545_v25  ;;  %v2109_v11 = vpop.f32.mrb[37].mxu1  ;;  %v238_v25 = vsel %vm236_vm2, %v1872_v21, 7 }
0x1475   :  { %v1750_v12 = vpop.f32.mrb[38].mxu1  ;;  %vm419_vm3 = vcmp.eq.s32.totalorder %v238_v25, 0  ;;  %vm632_vm4 = vcmp.eq.s32.totalorder %v238_v25, 6  ;;  %vm838_vm5 = vcmp.eq.s32.totalorder %v238_v25, 5  ;;  %vm1044_vm6 = vcmp.eq.s32.totalorder %v238_v25, 4 }
0x1476   :  { %2282 = vtanh.f32 %v1781_v9  ;;  %v2110_v14 = vpop.f32.mrb[39].mxu1  ;;  %v1934_v23 = vmul.f32 -1.442695, %v1781_v9  ;;  %v420_v30 = vsel %vm419_vm3, 1, %v2422_v1  ;;  %v633_v33 = vsel %vm632_vm4, 1, %v2422_v1 }
0x1477   :  { %2284 = vpow2.f32 %v1933_v17  ;;  %v839_v52 = vsel %vm838_vm5, 1, %v2422_v1  ;;  %v1045_v36 = vsel %vm1044_vm6, 1, %v2422_v1  ;;  %vm426_vm7 = vcmp.eq.s32.totalorder %v238_v25, 7 }
0x1478   :  { %v427_v48 = vsel %vm426_vm7, 1, %v2422_v1  ;;  %vm625_vm8 = vcmp.eq.s32.totalorder %v238_v25, 1  ;;  %vm831_vm9 = vcmp.eq.s32.totalorder %v238_v25, 2  ;;  %vm1037_vm10 = vcmp.eq.s32.totalorder %v238_v25, 3 }
0x1479   :  { %v626_v38 = vsel %vm625_vm8, 1, %v2422_v1  ;;  %v832_v43 = vsel %vm831_vm9, 1, %v2422_v1  ;;  %v1038_v45 = vsel %vm1037_vm10, 1, %v2422_v1  ;;  %vm417_vm4 = vcmask 523520  }
0x1480   :  { %v2283_v15 = vpop.eup %2282 }
0x1481   :  { %1791 = vrot.lane.b32.xlu1 %v2283_v15, %s2418_s1  ;;  %v2285_v60 = vpop.eup %2284 }
0x1482   :  { %v1759_v18 = vadd.f32 1.0, %v2285_v60 }
0x1484   :  { %2286 = vrcp.f32 %v1759_v18 }
0x1485   :  { %2288 = vpow2.f32 %v1934_v23 }
0x148e   :  { %v2864_v24 = vpop.eup %2286 }
0x148f   :  { %v2289_v34 = vpop.eup %2288  ;;  %v1763_v46 = vmul.f32 %v2864_v24, %v2828_v42 }
0x1490   :  { %v1785_v32 = vadd.f32 1.0, %v2289_v34 }
0x1492   :  { %2290 = vrcp.f32 %v1785_v32 }
0x149c   :  { %v2872_v37 = vpop.eup %2290 }
0x149d   :  { %v1789_v1 = vmul.f32 %v2872_v37, %v2833_v41 }
0x14d8   :  { %v1766_v56 = vpop.permute.xlu0 %1765 }
0x14d9   :  { %v1768_v29 = vmul.f32 %v2864_v24, %v1766_v56 }
0x14db   :  { %1770 = vrot.lane.b32.xlu0 %v1768_v29, %s2424_s4 }
0x14df   :  { %422 = vperm.xlu0 %2124, %v420_v30  }
0x14e3   :  { %635 = vperm.xlu0 %2124, %v633_v33  }
0x14e7   :  { %841 = vperm.xlu0 %2124, %v839_v52  }
0x14eb   :  { %1047 = vperm.xlu0 %2124, %v1045_v36  }
0x14f3   :  { %v1792_v39 = vpop.permute.xlu1 %1791 }
0x14f4   :  { %v1794_v40 = vmul.f32 %v2872_v37, %v1792_v39 }
0x14f6   :  { %1796 = vrot.lane.b32.xlu1 %v1794_v40, %s2424_s4 }
0x14fa   :  { %429 = vperm.xlu1 %2125, %v427_v48  }
0x14fe   :  { %628 = vperm.xlu1 %2125, %v626_v38  }
0x1502   :  { %834 = vperm.xlu1 %2125, %v832_v43  }
0x1506   :  { %1040 = vperm.xlu1 %2125, %v1038_v45  }
0x154d   :  { %v1771_v44 = vpop.permute.xlu0 %1770 }
0x154e   :  { %v1773_v47 = vadd.f32 %v1771_v44, %v1763_v46 }
0x1550   :  { %2292 = vtanh.f32 %v1773_v47 }
0x155a   :  { %v2293_v49 = vpop.eup %2292 }
0x155b   :  { %1776 = vrot.lane.b32.xlu1 %v2293_v49, %s2418_s1 }
0x155e   :  { %v423_v55 = vpop.permute.xlu0 %422 }
0x155f   :  { %408 = vrot.lane.b32.xlu1 %v2593_v27, %s2424_s4  ;;  %vm424_vm11 = vcmp.eq.s32.totalorder %v423_v55, 1 }
0x1560   :  { %v425_v62 = vsel %vm424_vm11, %v2593_v27, 0.0 }
0x1562   :  { %v636_v57 = vpop.permute.xlu0 %635 }
0x1563   :  { %614 = vrot.lane.b32.xlu1 %v2637_v22, %s2424_s4  ;;  %vm637_vm2 = vcmp.eq.s32.totalorder %v636_v57, 1 }
0x1566   :  { %v842_v28 = vpop.permute.xlu0 %841 }
0x1567   :  { %820 = vrot.lane.b32.xlu1 %v2679_v16, %s2424_s4  ;;  %vm843_vm0 = vcmp.eq.s32.totalorder %v842_v28, 1 }
0x1568   :  { %v1797_v51 = vpop.permute.xlu1 %1796 }
0x1569   :  { %v1799_v42 = vadd.f32 %v1797_v51, %v1789_v1 }
0x156a   :  { %v1048_v3 = vpop.permute.xlu0 %1047 }
0x156b   :  { %2294 = vtanh.f32 %v1799_v42  ;;  %1026 = vrot.lane.b32.xlu1 %v2721_v10, %s2424_s4  ;;  %vm1049_vm15 = vcmp.eq.s32.totalorder %v1048_v3, 1 }
0x156f   :  { %1237 = vrot.lane.b32.xlu1 %v2768_v7, %s2418_s1 }
0x1573   :  { %1429 = vrot.lane.b32.xlu1 %v2810_v2, %s2418_s1 }
0x1575   :  { %v2295_v53 = vpop.eup %2294 }
0x1576   :  { %1802 = vrot.lane.b32.xlu0 %v2295_v53, %s2418_s1 }
0x1577   :  { %1621 = vrot.lane.b32.xlu1 %v2850_v59, %s2418_s1 }
0x1579   :  { %v430_v41 = vpop.permute.xlu1 %429 }
0x157a   :  { %413 = vrot.lane.b32.xlu0 %v2598_v31, %s2418_s1  ;;  %vm431_vm3 = vcmp.eq.s32.totalorder %v430_v41, 1 }
0x157d   :  { %v629_v35 = vpop.permute.xlu1 %628 }
0x157e   :  { %620 = vrot.lane.b32.xlu0 %v2642_v26, %s2418_s1  ;;  %vm630_vm12 = vcmp.eq.s32.totalorder %v629_v35, 1 }
0x157f   :  { %v631_v63 = vsel %vm630_vm12, %v2637_v22, %v425_v62 }
0x1581   :  { %v835_v61 = vpop.permute.xlu1 %834 }
0x1582   :  { %826 = vrot.lane.b32.xlu0 %v2684_v19, %s2418_s1  ;;  %vm836_vm13 = vcmp.eq.s32.totalorder %v835_v61, 1 }
0x1583   :  { %v837_v4 = vsel %vm836_vm13, %v2679_v16, %v631_v63 }
0x1585   :  { %v1041_v0 = vpop.permute.xlu1 %1040 }
0x1586   :  { %1032 = vrot.lane.b32.xlu0 %v2726_v13, %s2418_s1  ;;  %vm1042_vm14 = vcmp.eq.s32.totalorder %v1041_v0, 1 }
0x1587   :  { %v1043_v5 = vsel %vm1042_vm14, %v2721_v10, %v837_v4 }
0x1588   :  { %v1241_v6 = vsel %vm1049_vm15, %v2763_v58, %v1043_v5 }
0x1589   :  { %v1433_v8 = vsel %vm843_vm0, %v2805_v54, %v1241_v6 }
0x158a   :  { %1232 = vrot.lane.b32.xlu0 %v2763_v58, %s2424_s4  ;;  %v1625_v22 = vsel %vm637_vm2, %v2845_v50, %v1433_v8 }
0x158e   :  { %1424 = vrot.lane.b32.xlu0 %v2805_v54, %s2424_s4  ;;  %v432_v54 = vsel %vm431_vm3, %v2598_v31, 0.0 }
0x158f   :  { %v638_v12 = vsel %vm637_vm2, %v2642_v26, %v432_v54 }
0x1592   :  { %1616 = vrot.lane.b32.xlu0 %v2845_v50, %s2424_s4  ;;  %v844_v50 = vsel %vm843_vm0, %v2684_v19, %v638_v12 }
0x1593   :  { %v1050_v17 = vsel %vm1049_vm15, %v2726_v13, %v844_v50 }
0x1594   :  { %v1242_v31 = vsel %vm1042_vm14, %v2768_v7, %v1050_v17 }
0x1595   :  { %v1434_v26 = vsel %vm836_vm13, %v2810_v2, %v1242_v31 }
0x1596   :  { %v1626_v19 = vsel %vm630_vm12, %v2850_v59, %v1434_v26 }
0x15cd   :  { %v1777_v27 = vpop.permute.xlu1 %1776 }
0x15ce   :  { %v1779_v9 = vmul.f32 %v2864_v24, %v1777_v27 }
0x15d0   :  { %1807 = vrot.lane.b32.xlu0 %v1779_v9, %s2424_s4  ;;  %v1816_v16 = vsel %vm431_vm3, %v1779_v9, %v1625_v22 }
0x15d1   :  { %1819 = vrot.lane.b32.xlu1 %v1816_v16, %s2424_s4  ;;  %v409_v10 = vpop.permute.xlu1 %408  ;;  %s2426_s4 = smov [#allocation11]  }
0x15d2   :  { %411 = vst.msk [vmem:[#allocation10] sm:$0xff] %vm133_vm1, %v409_v10  ;;  %s1846_s29 = sshll.u32 %s2426_s4, 4  ;;  %s2962_s29 = int_to_ptr.vmem [resolvable:$true] %s1846_s29 }
0x15d5   :  { %v615_v58 = vpop.permute.xlu1 %614 }
0x15d6   :  { %618 = vst.msk [vmem:[#allocation10 + $0x8] sm:$0xff] %vm133_vm1, %v615_v58 }
0x15d9   :  { %v821_v11 = vpop.permute.xlu1 %820 }
0x15da   :  { %824 = vst.msk [vmem:[#allocation10 + $0x10] sm:$0xff] %vm133_vm1, %v821_v11 }
0x15dd   :  { %v1027_v14 = vpop.permute.xlu1 %1026 }
0x15de   :  { %1030 = vst.msk [vmem:[#allocation10 + $0x18] sm:$0xff] %vm133_vm1, %v1027_v14 }
0x15e1   :  { %v1238_v15 = vpop.permute.xlu1 %1237 }
0x15e2   :  { %1240 = vst.msk [vmem:[#allocation10 + $0x18] sm:$0xff] %vm417_vm4, %v1238_v15 }
0x15e5   :  { %v1430_v60 = vpop.permute.xlu1 %1429 }
0x15e6   :  { %1432 = vst.msk [vmem:[#allocation10 + $0x10] sm:$0xff] %vm417_vm4, %v1430_v60 }
0x15e8   :  { %v1803_v18 = vpop.permute.xlu0 %1802 }
0x15e9   :  { %v1805_v20 = vmul.f32 %v2872_v37, %v1803_v18  ;;  %v1622_v21 = vpop.permute.xlu1 %1621 }
0x15ea   :  { %1624 = vst.msk [vmem:[#allocation10 + $0x8] sm:$0xff] %vm417_vm4, %v1622_v21 }
0x15eb   :  { %1812 = vrot.lane.b32.xlu1 %v1805_v20, %s2418_s1  ;;  %v1817_v13 = vsel %vm424_vm11, %v1805_v20, %v1626_v19 }
0x15ec   :  { %1824 = vrot.lane.b32.xlu0 %v1817_v13, %s2418_s1  ;;  %v414_v7 = vpop.permute.xlu0 %413  ;;  %s1833_s1 = sshll.u32 %s2425_s5, 4  ;;  %s1834_s1 = int_to_ptr.vmem [resolvable:$true] %s1833_s1 }
0x15ed   :  { %418 = vst.msk [vmem:[#allocation10 + $0x38] sm:$0xff] %vm417_vm4, %v414_v7  ;;  %s2362_s30 = scalar_lea.vmem %s1834_s1, 1024  ;;  %p2367_p11 = scmp.lt.s32.totalorder %s1834_s1, %s1834_s1 }
0x15ee   :  { %p2363_p10 = scmp.ne.s32.totalorder %s1834_s1, %s2362_s30  ;;  %p2368_p12 = scmp.lt.s32.totalorder %s2362_s30, %s2362_s30 }
0x15f0   :  { %v621_v23 = vpop.permute.xlu0 %620  ;;  %p2369_p13 = por %p2368_p12, %p2367_p11 }
0x15f1   :  { %624 = vst.msk [vmem:[#allocation10 + $0x30] sm:$0xff] %vm417_vm4, %v621_v23 }
0x15f2   :  { %p2370_p0 = pnand %p2369_p13, %p2363_p10 }
0x15f4   :  { %v827_v2 = vpop.permute.xlu0 %826 }
0x15f5   :  { %830 = vst.msk [vmem:[#allocation10 + $0x28] sm:$0xff] %vm417_vm4, %v827_v2 }
0x15f8   :  { %v1033_v25 = vpop.permute.xlu0 %1032 }
0x15f9   :  { %1036 = vst.msk [vmem:[#allocation10 + $0x20] sm:$0xff] %vm417_vm4, %v1033_v25 }
0x15fc   :  { %v1233_v24 = vpop.permute.xlu0 %1232 }
0x15fd   :  { %1235 = vst.msk [vmem:[#allocation10 + $0x20] sm:$0xff] %vm133_vm1, %v1233_v24 }
0x1600   :  { %v1425_v59 = vpop.permute.xlu0 %1424 }
0x1601   :  { %1427 = vst.msk [vmem:[#allocation10 + $0x28] sm:$0xff] %vm133_vm1, %v1425_v59 }
0x1604   :  { %v1617_v56 = vpop.permute.xlu0 %1616 }
0x1605   :  { %1619 = vst.msk [vmem:[#allocation10 + $0x30] sm:$0xff] %vm133_vm1, %v1617_v56 }
0x1642   :  { %v1808_v29 = vpop.permute.xlu0 %1807 }
0x1643   :  { %1810 = vst.msk [vmem:[#allocation10 + $0x38] sm:$0xff] %vm133_vm1, %v1808_v29  ;;  %v1820_v30 = vpop.permute.xlu1 %1819 }
0x1644   :  { %1822 = vst.msk [vmem:[#allocation11] sm:$0xff] %vm133_vm1, %v1820_v30 }
0x165d   :  { %v1813_v33 = vpop.permute.xlu1 %1812 }
0x165e   :  { %1815 = vst.msk [vmem:[#allocation10] sm:$0xff] %vm417_vm4, %v1813_v33  ;;  %v1825_v34 = vpop.permute.xlu0 %1824 }
0x165f   :  { %1827 = vst.msk [vmem:[#allocation11] sm:$0xff] %vm417_vm4, %v1825_v34 }
0x1660   :  { %2373 = shalt.err (!%p2370_p0)
}
0x1661   :  { %s2374_s10 = scalar_lea.hbm %s3004_s6, 1024 }
0x1662   :  { %p2375_p1 = scmp.ne.s32.totalorder %s3004_s6, %s2374_s10  ;;  %p2378_p2 = scmp.lt.u32.totalorder %s2374_s10, %s3004_s6 }
0x1664   :  { %p2380_p3 = pnand %p2378_p2, %p2375_p1 }
0x1666   :  { %2383 = shalt.err (!%p2380_p3)
}
0x1667   :  { %1839 = dma.vmem_to_hbm [thread:$0]  %s1834_s1, 1024, %s3004_s6, [#allocation6], %s2415_s11, %s2415_s11, %s2416_s12  }
0x1668   :  { %s2384_s3 = scalar_lea.vmem %s2962_s29, 128  ;;  %p2389_p5 = scmp.lt.s32.totalorder %s2962_s29, %s2962_s29 }
0x1669   :  { %p2385_p4 = scmp.ne.s32.totalorder %s2962_s29, %s2384_s3  ;;  %p2390_p6 = scmp.lt.s32.totalorder %s2384_s3, %s2384_s3 }
0x166b   :  { %p2391_p7 = por %p2390_p6, %p2389_p5 }
0x166d   :  { %p2392_p8 = pnand %p2391_p7, %p2385_p4 }
0x166f   :  { %2395 = shalt.err (!%p2392_p8)
}
0x1670   :  { %s2396_s20 = scalar_lea.hbm %s3005_s7, 128 }
0x1671   :  { %p2397_p9 = scmp.ne.s32.totalorder %s3005_s7, %s2396_s20  ;;  %p2400_p10 = scmp.lt.u32.totalorder %s2396_s20, %s3005_s7 }
0x1673   :  { %p2402_p11 = pnand %p2400_p10, %p2397_p9 }
0x1675   :  { %2405 = shalt.err (!%p2402_p11)
}
0x1676   :  { %1849 = dma.vmem_to_hbm [thread:$0]  %s2962_s29, 128, %s3005_s7, [#allocation12]  }
0x1677   :  { %2410 = dma.done.wait [#allocation6], 1024  }
0x1678   :  { %2411 = vsyncadd [#allocation6], 4294966272 }
0x1679   :  { %2412 = dma.done.wait [#allocation12], 128  }
0x167a   :  { %2413 = vsyncadd [#allocation12], 4294967168 }
0x167b   :  { %1856 = vsyncpa [#allocation5], 1 }
0x167c   :  { %1857 = vsyncpa [#allocation8], 1 }
0x167d   :  { %1858 = vsyncpa [#allocation6], 1 }
0x167e   :  { %1859 = vsyncpa [#allocation12], 1 }

</bundles_post_ra>
